<compile_context>
chip_gen: v6e
topology: v6e:2x2x1
jax: 0.10.0
libtpu: 0.0.40
codegen_flags: <defaults>
</compile_context>

<pallas_src>
import functools

import jax
import jax.numpy as jnp
import numpy as np
from jax import lax
from jax.experimental import pallas as pl
from jax.experimental.pallas import tpu as pltpu


# ----------------------------------------------------------------------------
# Small helpers
# ----------------------------------------------------------------------------
def _round_up(x, m):
    return ((x + m - 1) // m) * m


def _tpu_generation_info():
    """Return (vmem_bytes, num_tensorcores) with conservative fallbacks."""
    vmem_bytes = 64 << 20          # v7x-safe default
    num_tc = 1
    try:
        info = pltpu.get_tpu_info()
        vmem_bytes = int(getattr(info, "vmem_capacity_bytes", vmem_bytes))
    except Exception:
        pass
    try:
        kind = jax.devices()[0].device_kind.lower()
        if "v7" in kind:
            num_tc = 2             # two TensorCores per chip -> split batch
        elif any(t in kind for t in ("v4", "v5", "v6")):
            vmem_bytes = max(vmem_bytes, 128 << 20)
    except Exception:
        pass
    return vmem_bytes, num_tc


def _pad_gates(w, h, hp):
    """Pad each of the 4 gate blocks along axis 0 from h to hp rows (zeros)."""
    w = jnp.asarray(w, jnp.float32)
    if hp == h:
        return w
    zeros = jnp.zeros((hp - h,) + w.shape[1:], jnp.float32)
    gates = [w[g * h:(g + 1) * h] for g in range(4)]
    return jnp.concatenate(
        [jnp.concatenate([g_, zeros], axis=0) for g_ in gates], axis=0)


# ----------------------------------------------------------------------------
# Pallas kernel: one layer, fused input projection + time-blocked recurrence.
# Grid = (batch_blocks, time_blocks); (h, c) carried across time blocks in
# VMEM scratch (per batch block).
# ----------------------------------------------------------------------------
def _nested_lstm_layer_kernel(
    x_ref,      # (T_BLK, B_BLK, D_in) f32   layer input block
    wih_ref,    # (D_in, 4Hp)          bf16  W_ih^T (gate-padded)
    whh_ref,    # (Hp,   4Hp)          bf16  W_hh^T (gate-padded)
    bias_ref,   # (1, 4Hp)             f32   b_ih + b_hh (gate-padded)
    h0_ref,     # (B_BLK, Hp)          f32
    c0_ref,     # (B_BLK, Hp)          f32
    out_ref,    # (T_BLK, B_BLK, Hp)   f32   h_t for every step in the block
    hn_ref,     # (B_BLK, Hp)          f32   final hidden state
    cn_ref,     # (B_BLK, Hp)          f32   final cell state
    h_s,        # VMEM scratch (B_BLK, Hp) f32   carried hidden
    c_s,        # VMEM scratch (B_BLK, Hp) f32   carried cell
    ax_s,       # VMEM scratch (T_BLK, B_BLK, 4Hp) f32  block input projection
    *,
    hidden,     # Hp (lane-padded hidden width)
    t_blk,
    seq_len,    # true (unpadded) sequence length
    masked,     # bool: seq was padded -> mask invalid steps
    unroll,
):
    tb = pl.program_id(1)
    Hp = hidden

    @pl.when(tb == 0)
    def _():
        h_s[...] = h0_ref[...]
        c_s[...] = c0_ref[...]

    # ---- fused input projection for the whole time block -------------------
    # One big MXU GEMM with M = t_blk*b_blk; off the serial h-recurrence path.
    t_b, b_b, d_in = x_ref.shape
    x_flat = x_ref[...].reshape(t_b * b_b, d_in).astype(jnp.bfloat16)
    ax = jnp.dot(x_flat, wih_ref[...], preferred_element_type=jnp.float32)
    ax = ax + bias_ref[...]                          # (t_b*b_b, 4Hp) f32
    ax_s[...] = ax.reshape(t_b, b_b, 4 * Hp)

    # Hoist the (constant) recurrent weight load out of the recurrence.
    whh = whh_ref[...]                               # (Hp, 4Hp) bf16

    def step(t, carry):
        h_prev, c_prev = carry                       # f32 (b_b, Hp)
        # Recurrent projection: bf16 operands, f32 accumulate on the MXU.
        hh = jnp.dot(h_prev.astype(jnp.bfloat16), whh,
                     preferred_element_type=jnp.float32)   # (b_b, 4Hp)
        affine = ax_s[t] + hh

        # Gate order per the module: sigmoid over [f, i, o], tanh over [g].
        fio = jax.nn.sigmoid(affine[:, :3 * Hp])     # one EUP pass, 3 gates
        g = jnp.tanh(affine[:, 3 * Hp:])
        f_g = fio[:, :Hp]
        i_g = fio[:, Hp:2 * Hp]
        o_g = fio[:, 2 * Hp:]

        # Additive state_fn -> classical LSTM; identity_fn=False -> tanh(c_t),
        # with the squashed cell carried forward (exactly as the module does).
        c_new = jnp.tanh(g * i_g + c_prev * f_g)
        h_new = c_new * o_g

        if masked:
            valid = (tb * t_blk + t) < seq_len       # skip padded timesteps
            h_new = jnp.where(valid, h_new, h_prev)
            c_new = jnp.where(valid, c_new, c_prev)

        out_ref[t] = h_new
        return h_new, c_new

    h_fin, c_fin = lax.fori_loop(0, t_blk, step, (h_s[...], c_s[...]),
                                 unroll=unroll)
    h_s[...] = h_fin
    c_s[...] = c_fin

    # Only the last time block writes the final states back to HBM.
    @pl.when(tb == pl.num_programs(1) - 1)
    def _():
        hn_ref[...] = h_fin
        cn_ref[...] = c_fin


# ----------------------------------------------------------------------------
# Per-layer wrapper
# ----------------------------------------------------------------------------
def _run_layer(x, w_ih_p, w_hh_p, bias_p, h0_p, c0_p, *, hp, vmem_bytes,
               num_tc):
    """One NestedLSTM layer over the full sequence.

    x      : (seq, B_pad, D_in) f32 (batch already padded to a multiple of 16)
    w_ih_p : (4Hp, D_in) f32 gate-padded input weights
    w_hh_p : (4Hp, Hp)   f32 gate-padded recurrent weights
    bias_p : (4Hp,)      f32 gate-padded (b_ih + b_hh)
    h0_p/c0_p : (B_pad, Hp) f32
    Returns (out (seq, B_pad, Hp), h_n (B_pad, Hp), c_n (B_pad, Hp)).
    """
    seq, b_pad, d_in = x.shape
    Hp = hp

    # ---- batch blocking: split only where a second TensorCore exists -------
    if num_tc >= 2 and b_pad >= 32 and (b_pad // 2) % 16 == 0:
        b_blk = b_pad // 2
    else:
        b_blk = b_pad
    nb = b_pad // b_blk

    # ---- generation-aware time blocking (fit double-buffered blocks) -------
    f32b, bf16b = 4, 2
    fixed = (2 * d_in * 4 * Hp * bf16b      # W_ih^T block (double-buffered)
             + 2 * Hp * 4 * Hp * bf16b      # W_hh^T block (double-buffered)
             + 2 * 4 * Hp * f32b            # bias block
             + 8 * b_blk * Hp * f32b        # h0/c0/hn/cn blocks (db)
             + 2 * b_blk * Hp * f32b)       # carried h/c scratch
    per_t = b_blk * (2 * d_in * f32b        # x block   (double-buffered)
                     + 2 * Hp * f32b        # out block (double-buffered)
                     + 4 * Hp * f32b)       # ax scratch (f32)
    budget = int(vmem_bytes * 0.5) - fixed - (4 << 20)
    t_cap = max(1, min(seq, (budget // per_t) if budget > 0 else 1, 128))
    nt = -(-seq // t_cap)                   # ceil: number of time blocks
    t_blk = -(-seq // nt)                   # balanced block, minimal padding
    seq_pad = nt * t_blk
    masked = seq_pad != seq
    if masked:
        x = jnp.pad(x, ((0, seq_pad - seq), (0, 0), (0, 0)))

    need = fixed + per_t * t_blk
    vmem_limit = int(min(max(need * 2 + (8 << 20), 16 << 20),
                         int(vmem_bytes * 0.85)))

    unroll = True if t_blk <= 16 else 8     # partial unroll for big blocks

    wih_t = w_ih_p.T.astype(jnp.bfloat16)           # (D_in, 4Hp)
    whh_t = w_hh_p.T.astype(jnp.bfloat16)           # (Hp,   4Hp)
    bias2 = bias_p.reshape(1, 4 * Hp).astype(jnp.float32)

    kernel = functools.partial(
        _nested_lstm_layer_kernel, hidden=Hp, t_blk=t_blk, seq_len=seq,
        masked=masked, unroll=unroll)

    out_shapes = (
        jax.ShapeDtypeStruct((seq_pad, b_pad, Hp), jnp.float32),  # h_t slab
        jax.ShapeDtypeStruct((b_pad, Hp), jnp.float32),           # h_n
        jax.ShapeDtypeStruct((b_pad, Hp), jnp.float32),           # c_n
    )

    grid_spec = pltpu.PrefetchScalarGridSpec(
        num_scalar_prefetch=0,
        grid=(nb, nt),
        in_specs=[
            pl.BlockSpec((t_blk, b_blk, d_in), lambda b, t: (t, b, 0)),   # x
            pl.BlockSpec((d_in, 4 * Hp), lambda b, t: (0, 0)),            # Wih^T
            pl.BlockSpec((Hp, 4 * Hp), lambda b, t: (0, 0)),              # Whh^T
            pl.BlockSpec((1, 4 * Hp), lambda b, t: (0, 0)),               # bias
            pl.BlockSpec((b_blk, Hp), lambda b, t: (b, 0)),               # h0
            pl.BlockSpec((b_blk, Hp), lambda b, t: (b, 0)),               # c0
        ],
        out_specs=[
            pl.BlockSpec((t_blk, b_blk, Hp), lambda b, t: (t, b, 0)),     # h_t
            pl.BlockSpec((b_blk, Hp), lambda b, t: (b, 0)),               # h_n
            pl.BlockSpec((b_blk, Hp), lambda b, t: (b, 0)),               # c_n
        ],
        scratch_shapes=[
            pltpu.VMEM((b_blk, Hp), jnp.float32),             # carried h
            pltpu.VMEM((b_blk, Hp), jnp.float32),             # carried c
            pltpu.VMEM((t_blk, b_blk, 4 * Hp), jnp.float32),  # ax slab
        ],
    )

    out_seq, h_n, c_n = pl.pallas_call(
        kernel,
        out_shape=out_shapes,
        grid_spec=grid_spec,
        compiler_params=pltpu.CompilerParams(
            dimension_semantics=("parallel", "arbitrary"),
            vmem_limit_bytes=vmem_limit,
        ),
    )(x, wih_t, whh_t, bias2, h0_p, c0_p)

    if masked:
        out_seq = out_seq[:seq]
    return out_seq, h_n, c_n


# ----------------------------------------------------------------------------
# Full forward (stack of layers)
# ----------------------------------------------------------------------------
def nested_lstm_forward(inputs, h_0, c_0, params):
    """NestedLSTM forward (unidirectional, batch_first=False, additive state_fn).

    inputs : (seq, batch, input_size)
    h_0,c_0: (num_layers, batch, hidden)
    params : list per layer of dicts {w_ih, w_hh, b_ih, b_hh}
    Returns (output, (h_n, c_n, s_n)) matching the PyTorch module.
    """
    num_layers = len(params)
    seq, B, _ = inputs.shape
    H = h_0.shape[-1]
    Hp = max(128, _round_up(H, 128))          # lane-aligned hidden width
    B_pad = max(16, _round_up(B, 16))         # full packed bf16 sublane tile
    vmem_bytes, num_tc = _tpu_generation_info()

    x = jnp.asarray(inputs, jnp.float32)
    x = jnp.pad(x, ((0, 0), (0, B_pad - B), (0, 0)))

    h_n, c_n, s_n = [], [], []
    for layer in range(num_layers):
        p = params[layer]
        w_ih = _pad_gates(p["w_ih"], H, Hp)                    # (4Hp, D_in)
        w_hh = _pad_gates(p["w_hh"], H, Hp)                    # (4Hp, H)
        bias = _pad_gates(jnp.asarray(p["b_ih"], jnp.float32)
                          + jnp.asarray(p["b_hh"], jnp.float32), H, Hp)
        if Hp != H:
            w_hh = jnp.pad(w_hh, ((0, 0), (0, Hp - H)))        # (4Hp, Hp)
            if layer > 0:
                w_ih = jnp.pad(w_ih, ((0, 0), (0, Hp - H)))    # padded input
        h0 = jnp.pad(jnp.asarray(h_0[layer], jnp.float32),
                     ((0, B_pad - B), (0, Hp - H)))
        c0 = jnp.pad(jnp.asarray(c_0[layer], jnp.float32),
                     ((0, B_pad - B), (0, Hp - H)))

        out_seq, h_last, c_last = _run_layer(
            x, w_ih, w_hh, bias, h0, c0,
            hp=Hp, vmem_bytes=vmem_bytes, num_tc=num_tc)

        h_n.append(h_last[:B, :H][None])
        c_n.append(c_last[:B, :H][None])
        s_n.append([None])                 # additive state_fn is stateless
        x = out_seq                        # keep padded between layers

    output = x[:, :B, :H]
    return output, (jnp.concatenate(h_n, 0), jnp.concatenate(c_n, 0), s_n)


# ----------------------------------------------------------------------------
# Pure-JAX reference using the same numerics (bf16 matmul operands, f32
# accumulation, f32 gate math) for a tight correctness check.
# ----------------------------------------------------------------------------
def _reference_forward(inputs, h_0, c_0, params):
    num_layers = len(params)
    rnn_in = jnp.asarray(inputs, jnp.float32)
    h_n, c_n = [], []
    for layer in range(num_layers):
        p = params[layer]
        H = p["w_hh"].shape[1]
        wih_t = jnp.asarray(p["w_ih"], jnp.float32).T.astype(jnp.bfloat16)
        whh_t = jnp.asarray(p["w_hh"], jnp.float32).T.astype(jnp.bfloat16)
        bias = jnp.asarray(p["b_ih"] + p["b_hh"], jnp.float32)
        h, c = h_0[layer], c_0[layer]
        outs = []
        for t in range(rnn_in.shape[0]):
            xt = rnn_in[t]
            affine = (jnp.dot(xt.astype(jnp.bfloat16), wih_t,
                              preferred_element_type=jnp.float32) + bias
                      + jnp.dot(h.astype(jnp.bfloat16), whh_t,
                                preferred_element_type=jnp.float32))
            f = jax.nn.sigmoid(affine[:, :H])
            i = jax.nn.sigmoid(affine[:, H:2 * H])
            o = jax.nn.sigmoid(affine[:, 2 * H:3 * H])
            g = jnp.tanh(affine[:, 3 * H:])
            c = jnp.tanh(g * i + c * f)
            h = c * o
            outs.append(h)
        h_n.append(h[None])
        c_n.append(c[None])
        rnn_in = jnp.stack(outs, 0)
    return rnn_in, jnp.concatenate(h_n, 0), jnp.concatenate(c_n, 0)


# ----------------------------------------------------------------------------
# Deterministic parameter construction (synthetic; mirrors __init__ shapes).
# ----------------------------------------------------------------------------
def _make_params(key, input_size, hidden_size, num_layers):
    params = []
    for layer in range(num_layers):
        d_in = input_size if layer == 0 else hidden_size
        key, k1, k2, k3, k4 = jax.random.split(key, 5)
        params.append(dict(
            w_ih=jax.random.normal(k1, (4 * hidden_size, d_in), jnp.float32)
            * (1.0 / np.sqrt(d_in)),
            w_hh=jax.random.normal(k2, (4 * hidden_size, hidden_size),
                                   jnp.float32) * (1.0 / np.sqrt(hidden_size)),
            b_ih=0.01 * jax.random.normal(k3, (4 * hidden_size,), jnp.float32),
            b_hh=0.01 * jax.random.normal(k4, (4 * hidden_size,), jnp.float32),
        ))
    return params


if __name__ == "__main__":
    SEQ, BATCH, INPUT, HIDDEN, LAYERS = 8, 2, 16, 32, 2

    key = jax.random.PRNGKey(0)
    key, kx, kh, kc = jax.random.split(key, 4)
    x = jax.random.normal(kx, (SEQ, BATCH, INPUT), jnp.float32)
    h0 = jax.random.normal(kh, (LAYERS, BATCH, HIDDEN), jnp.float32)
    c0 = jax.random.normal(kc, (LAYERS, BATCH, HIDDEN), jnp.float32)
    params = _make_params(key, INPUT, HIDDEN, LAYERS)

    output, (h_n, c_n, s_n) = nested_lstm_forward(x, h0, c0, params)
    jax.block_until_ready(output)
    jax.block_until_ready(h_n)
    jax.block_until_ready(c_n)

    # Correctness check against the same-math pure-JAX reference.
    ref_out, ref_hn, ref_cn = _reference_forward(x, h0, c0, params)
    np.testing.assert_allclose(np.asarray(output), np.asarray(ref_out),
                               rtol=2e-3, atol=2e-3)
    np.testing.assert_allclose(np.asarray(h_n), np.asarray(ref_hn),
                               rtol=2e-3, atol=2e-3)
    np.testing.assert_allclose(np.asarray(c_n), np.asarray(ref_cn),
                               rtol=2e-3, atol=2e-3)

    assert output.shape == (SEQ, BATCH, HIDDEN)
    assert h_n.shape == (LAYERS, BATCH, HIDDEN)
    assert c_n.shape == (LAYERS, BATCH, HIDDEN)
    assert s_n == [[None]] * LAYERS

    print("KERNEL_OK")
</pallas_src>

<mosaic_0001>
module attributes {stable_mosaic.version = 11 : i64} {
  func.func @_nested_lstm_layer_kernel(%arg0: i32, %arg1: i32, %arg2: memref<8x16x16xf32, #tpu.memory_space<vmem>>, %arg3: memref<16x512xbf16, #tpu.memory_space<vmem>>, %arg4: memref<128x512xbf16, #tpu.memory_space<vmem>>, %arg5: memref<1x512xf32, #tpu.memory_space<vmem>>, %arg6: memref<16x128xf32, #tpu.memory_space<vmem>>, %arg7: memref<16x128xf32, #tpu.memory_space<vmem>>, %arg8: memref<8x16x128xf32, #tpu.memory_space<vmem>>, %arg9: memref<16x128xf32, #tpu.memory_space<vmem>>, %arg10: memref<16x128xf32, #tpu.memory_space<vmem>>, %arg11: memref<16x128xf32, #tpu.memory_space<vmem>>, %arg12: memref<16x128xf32, #tpu.memory_space<vmem>>, %arg13: memref<8x16x512xf32, #tpu.memory_space<vmem>>) attributes {dimension_semantics = [#tpu.dimension_semantics<parallel>, #tpu.dimension_semantics<arbitrary>], iteration_bounds = array<i64: 1, 1>, scalar_prefetch = 0 : i64, scratch_operands = 3 : i64, tpu.core_type = #tpu.core_type<tc>, window_params = [{transform_indices = @transform_0, window_bounds = array<i64: 8, 16, 16>}, {pipeline_mode = #tpu.pipeline_mode<synchronous>, transform_indices = @transform_1, window_bounds = array<i64: 16, 512>}, {pipeline_mode = #tpu.pipeline_mode<synchronous>, transform_indices = @transform_2, window_bounds = array<i64: 128, 512>}, {pipeline_mode = #tpu.pipeline_mode<synchronous>, transform_indices = @transform_3, window_bounds = array<i64: 1, 512>}, {transform_indices = @transform_4, window_bounds = array<i64: 16, 128>}, {transform_indices = @transform_5, window_bounds = array<i64: 16, 128>}, {transform_indices = @transform_6, window_bounds = array<i64: 8, 16, 128>}, {transform_indices = @transform_7, window_bounds = array<i64: 16, 128>}, {transform_indices = @transform_8, window_bounds = array<i64: 16, 128>}]} {
    %c0_i32 = arith.constant 0 : i32
    %0 = arith.cmpi eq, %arg1, %c0_i32 : i32
    %1 = arith.extui %0 : i1 to i32
    %c0_i32_0 = arith.constant 0 : i32
    %2 = arith.cmpi ne, %1, %c0_i32_0 : i32
    scf.if %2 {
      %c0_71 = arith.constant 0 : index
      %c0_72 = arith.constant 0 : index
      %229 = vector.load %arg6[%c0_71, %c0_72] : memref<16x128xf32, #tpu.memory_space<vmem>>, vector<16x128xf32>
      %c0_73 = arith.constant 0 : index
      %c0_74 = arith.constant 0 : index
      %230 = vector.load %arg11[%c0_73, %c0_74] : memref<16x128xf32, #tpu.memory_space<vmem>>, vector<16x128xf32>
      tpu.vector_store %arg11[%c0_73, %c0_74], %229 {strides = array<i32>} : memref<16x128xf32, #tpu.memory_space<vmem>>, vector<16x128xf32>,
      %c0_75 = arith.constant 0 : index
      %c0_76 = arith.constant 0 : index
      %231 = vector.load %arg7[%c0_75, %c0_76] : memref<16x128xf32, #tpu.memory_space<vmem>>, vector<16x128xf32>
      %c0_77 = arith.constant 0 : index
      %c0_78 = arith.constant 0 : index
      %232 = vector.load %arg12[%c0_77, %c0_78] : memref<16x128xf32, #tpu.memory_space<vmem>>, vector<16x128xf32>
      tpu.vector_store %arg12[%c0_77, %c0_78], %231 {strides = array<i32>} : memref<16x128xf32, #tpu.memory_space<vmem>>, vector<16x128xf32>,
    } else {
    }
    %c0 = arith.constant 0 : index
    %c0_1 = arith.constant 0 : index
    %c0_2 = arith.constant 0 : index
    %3 = vector.load %arg2[%c0, %c0_1, %c0_2] : memref<8x16x16xf32, #tpu.memory_space<vmem>>, vector<8x16x16xf32>
    %4 = vector.shape_cast %3 : vector<8x16x16xf32> to vector<128x16xf32>
    %5 = arith.truncf %4 : vector<128x16xf32> to vector<128x16xbf16>
    %c0_3 = arith.constant 0 : index
    %c0_4 = arith.constant 0 : index
    %6 = vector.load %arg3[%c0_3, %c0_4] : memref<16x512xbf16, #tpu.memory_space<vmem>>, vector<16x512xbf16>
    %cst = arith.constant dense<0.000000e+00> : vector<128x512xf32>
    %7 = tpu.matmul %5, %6, %cst {dimension_numbers = #tpu.dot_dimension_numbers<[1], [0], [0], [1], [0, 0, 1, 1], [], []>} : vector<128x16xbf16>, vector<16x512xbf16>, vector<128x512xf32> -> vector<128x512xf32>
    %c0_5 = arith.constant 0 : index
    %c0_6 = arith.constant 0 : index
    %8 = vector.load %arg5[%c0_5, %c0_6] : memref<1x512xf32, #tpu.memory_space<vmem>>, vector<1x512xf32>
    %9 = vector.broadcast %8 : vector<1x512xf32> to vector<128x512xf32>
    %10 = arith.addf %7, %9 : vector<128x512xf32>
    %11 = vector.shape_cast %10 : vector<128x512xf32> to vector<8x16x512xf32>
    %c0_7 = arith.constant 0 : index
    %c0_8 = arith.constant 0 : index
    %c0_9 = arith.constant 0 : index
    %12 = vector.load %arg13[%c0_7, %c0_8, %c0_9] : memref<8x16x512xf32, #tpu.memory_space<vmem>>, vector<8x16x512xf32>
    tpu.vector_store %arg13[%c0_7, %c0_8, %c0_9], %11 {strides = array<i32>} : memref<8x16x512xf32, #tpu.memory_space<vmem>>, vector<8x16x512xf32>,
    %c0_10 = arith.constant 0 : index
    %c0_11 = arith.constant 0 : index
    %13 = vector.load %arg4[%c0_10, %c0_11] : memref<128x512xbf16, #tpu.memory_space<vmem>>, vector<128x512xbf16>
    %c0_12 = arith.constant 0 : index
    %c0_13 = arith.constant 0 : index
    %14 = vector.load %arg11[%c0_12, %c0_13] : memref<16x128xf32, #tpu.memory_space<vmem>>, vector<16x128xf32>
    %c0_14 = arith.constant 0 : index
    %c0_15 = arith.constant 0 : index
    %15 = vector.load %arg12[%c0_14, %c0_15] : memref<16x128xf32, #tpu.memory_space<vmem>>, vector<16x128xf32>
    %c0_i32_16 = arith.constant 0 : i32
    %16 = arith.truncf %14 : vector<16x128xf32> to vector<16x128xbf16>
    %cst_17 = arith.constant dense<0.000000e+00> : vector<16x512xf32>
    %17 = tpu.matmul %16, %13, %cst_17 {dimension_numbers = #tpu.dot_dimension_numbers<[1], [0], [0], [1], [0, 0, 1, 1], [], []>} : vector<16x128xbf16>, vector<128x512xbf16>, vector<16x512xf32> -> vector<16x512xf32>
    %18 = arith.index_cast %c0_i32_16 : i32 to index
    %c0_18 = arith.constant 0 : index
    %c0_19 = arith.constant 0 : index
    %19 = vector.load %arg13[%18, %c0_18, %c0_19] : memref<8x16x512xf32, #tpu.memory_space<vmem>>, vector<1x16x512xf32>
    %20 = vector.shape_cast %19 : vector<1x16x512xf32> to vector<16x512xf32>
    %21 = arith.addf %20, %17 : vector<16x512xf32>
    %22 = vector.extract_strided_slice %21 {offsets = [0, 0], sizes = [16, 384], strides = [1, 1]} : vector<16x512xf32> to vector<16x384xf32>
    %23 = arith.negf %22 : vector<16x384xf32>
    %24 = math.exp %23 : vector<16x384xf32>
    %cst_20 = arith.constant 1.000000e+00 : f32
    %25 = vector.broadcast %cst_20 : f32 to vector<16x384xf32>
    %26 = arith.addf %25, %24 : vector<16x384xf32>
    %27 = arith.divf %25, %26 : vector<16x384xf32>
    %28 = vector.extract_strided_slice %21 {offsets = [0, 384], sizes = [16, 128], strides = [1, 1]} : vector<16x512xf32> to vector<16x128xf32>
    %29 = math.tanh %28 : vector<16x128xf32>
    %30 = vector.extract_strided_slice %27 {offsets = [0, 0], sizes = [16, 128], strides = [1, 1]} : vector<16x384xf32> to vector<16x128xf32>
    %31 = vector.extract_strided_slice %27 {offsets = [0, 128], sizes = [16, 128], strides = [1, 1]} : vector<16x384xf32> to vector<16x128xf32>
    %32 = vector.extract_strided_slice %27 {offsets = [0, 256], sizes = [16, 128], strides = [1, 1]} : vector<16x384xf32> to vector<16x128xf32>
    %33 = arith.mulf %29, %31 : vector<16x128xf32>
    %34 = arith.mulf %15, %30 : vector<16x128xf32>
    %35 = arith.addf %33, %34 : vector<16x128xf32>
    %36 = math.tanh %35 : vector<16x128xf32>
    %37 = arith.mulf %36, %32 : vector<16x128xf32>
    %38 = arith.index_cast %c0_i32_16 : i32 to index
    %c0_21 = arith.constant 0 : index
    %c0_22 = arith.constant 0 : index
    %39 = vector.load %arg8[%38, %c0_21, %c0_22] : memref<8x16x128xf32, #tpu.memory_space<vmem>>, vector<1x16x128xf32>
    %40 = vector.shape_cast %39 : vector<1x16x128xf32> to vector<16x128xf32>
    %41 = vector.shape_cast %37 : vector<16x128xf32> to vector<1x16x128xf32>
    tpu.vector_store %arg8[%38, %c0_21, %c0_22], %41 {strides = array<i32>} : memref<8x16x128xf32, #tpu.memory_space<vmem>>, vector<1x16x128xf32>,
    %c1_i32 = arith.constant 1 : i32
    %42 = arith.truncf %37 : vector<16x128xf32> to vector<16x128xbf16>
    %cst_23 = arith.constant dense<0.000000e+00> : vector<16x512xf32>
    %43 = tpu.matmul %42, %13, %cst_23 {dimension_numbers = #tpu.dot_dimension_numbers<[1], [0], [0], [1], [0, 0, 1, 1], [], []>} : vector<16x128xbf16>, vector<128x512xbf16>, vector<16x512xf32> -> vector<16x512xf32>
    %44 = arith.index_cast %c1_i32 : i32 to index
    %c0_24 = arith.constant 0 : index
    %c0_25 = arith.constant 0 : index
    %45 = vector.load %arg13[%44, %c0_24, %c0_25] : memref<8x16x512xf32, #tpu.memory_space<vmem>>, vector<1x16x512xf32>
    %46 = vector.shape_cast %45 : vector<1x16x512xf32> to vector<16x512xf32>
    %47 = arith.addf %46, %43 : vector<16x512xf32>
    %48 = vector.extract_strided_slice %47 {offsets = [0, 0], sizes = [16, 384], strides = [1, 1]} : vector<16x512xf32> to vector<16x384xf32>
    %49 = arith.negf %48 : vector<16x384xf32>
    %50 = math.exp %49 : vector<16x384xf32>
    %cst_26 = arith.constant 1.000000e+00 : f32
    %51 = vector.broadcast %cst_26 : f32 to vector<16x384xf32>
    %52 = arith.addf %51, %50 : vector<16x384xf32>
    %53 = arith.divf %51, %52 : vector<16x384xf32>
    %54 = vector.extract_strided_slice %47 {offsets = [0, 384], sizes = [16, 128], strides = [1, 1]} : vector<16x512xf32> to vector<16x128xf32>
    %55 = math.tanh %54 : vector<16x128xf32>
    %56 = vector.extract_strided_slice %53 {offsets = [0, 0], sizes = [16, 128], strides = [1, 1]} : vector<16x384xf32> to vector<16x128xf32>
    %57 = vector.extract_strided_slice %53 {offsets = [0, 128], sizes = [16, 128], strides = [1, 1]} : vector<16x384xf32> to vector<16x128xf32>
    %58 = vector.extract_strided_slice %53 {offsets = [0, 256], sizes = [16, 128], strides = [1, 1]} : vector<16x384xf32> to vector<16x128xf32>
    %59 = arith.mulf %55, %57 : vector<16x128xf32>
    %60 = arith.mulf %36, %56 : vector<16x128xf32>
    %61 = arith.addf %59, %60 : vector<16x128xf32>
    %62 = math.tanh %61 : vector<16x128xf32>
    %63 = arith.mulf %62, %58 : vector<16x128xf32>
    %64 = arith.index_cast %c1_i32 : i32 to index
    %c0_27 = arith.constant 0 : index
    %c0_28 = arith.constant 0 : index
    %65 = vector.load %arg8[%64, %c0_27, %c0_28] : memref<8x16x128xf32, #tpu.memory_space<vmem>>, vector<1x16x128xf32>
    %66 = vector.shape_cast %65 : vector<1x16x128xf32> to vector<16x128xf32>
    %67 = vector.shape_cast %63 : vector<16x128xf32> to vector<1x16x128xf32>
    tpu.vector_store %arg8[%64, %c0_27, %c0_28], %67 {strides = array<i32>} : memref<8x16x128xf32, #tpu.memory_space<vmem>>, vector<1x16x128xf32>,
    %c2_i32 = arith.constant 2 : i32
    %68 = arith.truncf %63 : vector<16x128xf32> to vector<16x128xbf16>
    %cst_29 = arith.constant dense<0.000000e+00> : vector<16x512xf32>
    %69 = tpu.matmul %68, %13, %cst_29 {dimension_numbers = #tpu.dot_dimension_numbers<[1], [0], [0], [1], [0, 0, 1, 1], [], []>} : vector<16x128xbf16>, vector<128x512xbf16>, vector<16x512xf32> -> vector<16x512xf32>
    %70 = arith.index_cast %c2_i32 : i32 to index
    %c0_30 = arith.constant 0 : index
    %c0_31 = arith.constant 0 : index
    %71 = vector.load %arg13[%70, %c0_30, %c0_31] : memref<8x16x512xf32, #tpu.memory_space<vmem>>, vector<1x16x512xf32>
    %72 = vector.shape_cast %71 : vector<1x16x512xf32> to vector<16x512xf32>
    %73 = arith.addf %72, %69 : vector<16x512xf32>
    %74 = vector.extract_strided_slice %73 {offsets = [0, 0], sizes = [16, 384], strides = [1, 1]} : vector<16x512xf32> to vector<16x384xf32>
    %75 = arith.negf %74 : vector<16x384xf32>
    %76 = math.exp %75 : vector<16x384xf32>
    %cst_32 = arith.constant 1.000000e+00 : f32
    %77 = vector.broadcast %cst_32 : f32 to vector<16x384xf32>
    %78 = arith.addf %77, %76 : vector<16x384xf32>
    %79 = arith.divf %77, %78 : vector<16x384xf32>
    %80 = vector.extract_strided_slice %73 {offsets = [0, 384], sizes = [16, 128], strides = [1, 1]} : vector<16x512xf32> to vector<16x128xf32>
    %81 = math.tanh %80 : vector<16x128xf32>
    %82 = vector.extract_strided_slice %79 {offsets = [0, 0], sizes = [16, 128], strides = [1, 1]} : vector<16x384xf32> to vector<16x128xf32>
    %83 = vector.extract_strided_slice %79 {offsets = [0, 128], sizes = [16, 128], strides = [1, 1]} : vector<16x384xf32> to vector<16x128xf32>
    %84 = vector.extract_strided_slice %79 {offsets = [0, 256], sizes = [16, 128], strides = [1, 1]} : vector<16x384xf32> to vector<16x128xf32>
    %85 = arith.mulf %81, %83 : vector<16x128xf32>
    %86 = arith.mulf %62, %82 : vector<16x128xf32>
    %87 = arith.addf %85, %86 : vector<16x128xf32>
    %88 = math.tanh %87 : vector<16x128xf32>
    %89 = arith.mulf %88, %84 : vector<16x128xf32>
    %90 = arith.index_cast %c2_i32 : i32 to index
    %c0_33 = arith.constant 0 : index
    %c0_34 = arith.constant 0 : index
    %91 = vector.load %arg8[%90, %c0_33, %c0_34] : memref<8x16x128xf32, #tpu.memory_space<vmem>>, vector<1x16x128xf32>
    %92 = vector.shape_cast %91 : vector<1x16x128xf32> to vector<16x128xf32>
    %93 = vector.shape_cast %89 : vector<16x128xf32> to vector<1x16x128xf32>
    tpu.vector_store %arg8[%90, %c0_33, %c0_34], %93 {strides = array<i32>} : memref<8x16x128xf32, #tpu.memory_space<vmem>>, vector<1x16x128xf32>,
    %c3_i32 = arith.constant 3 : i32
    %94 = arith.truncf %89 : vector<16x128xf32> to vector<16x128xbf16>
    %cst_35 = arith.constant dense<0.000000e+00> : vector<16x512xf32>
    %95 = tpu.matmul %94, %13, %cst_35 {dimension_numbers = #tpu.dot_dimension_numbers<[1], [0], [0], [1], [0, 0, 1, 1], [], []>} : vector<16x128xbf16>, vector<128x512xbf16>, vector<16x512xf32> -> vector<16x512xf32>
    %96 = arith.index_cast %c3_i32 : i32 to index
    %c0_36 = arith.constant 0 : index
    %c0_37 = arith.constant 0 : index
    %97 = vector.load %arg13[%96, %c0_36, %c0_37] : memref<8x16x512xf32, #tpu.memory_space<vmem>>, vector<1x16x512xf32>
    %98 = vector.shape_cast %97 : vector<1x16x512xf32> to vector<16x512xf32>
    %99 = arith.addf %98, %95 : vector<16x512xf32>
    %100 = vector.extract_strided_slice %99 {offsets = [0, 0], sizes = [16, 384], strides = [1, 1]} : vector<16x512xf32> to vector<16x384xf32>
    %101 = arith.negf %100 : vector<16x384xf32>
    %102 = math.exp %101 : vector<16x384xf32>
    %cst_38 = arith.constant 1.000000e+00 : f32
    %103 = vector.broadcast %cst_38 : f32 to vector<16x384xf32>
    %104 = arith.addf %103, %102 : vector<16x384xf32>
    %105 = arith.divf %103, %104 : vector<16x384xf32>
    %106 = vector.extract_strided_slice %99 {offsets = [0, 384], sizes = [16, 128], strides = [1, 1]} : vector<16x512xf32> to vector<16x128xf32>
    %107 = math.tanh %106 : vector<16x128xf32>
    %108 = vector.extract_strided_slice %105 {offsets = [0, 0], sizes = [16, 128], strides = [1, 1]} : vector<16x384xf32> to vector<16x128xf32>
    %109 = vector.extract_strided_slice %105 {offsets = [0, 128], sizes = [16, 128], strides = [1, 1]} : vector<16x384xf32> to vector<16x128xf32>
    %110 = vector.extract_strided_slice %105 {offsets = [0, 256], sizes = [16, 128], strides = [1, 1]} : vector<16x384xf32> to vector<16x128xf32>
    %111 = arith.mulf %107, %109 : vector<16x128xf32>
    %112 = arith.mulf %88, %108 : vector<16x128xf32>
    %113 = arith.addf %111, %112 : vector<16x128xf32>
    %114 = math.tanh %113 : vector<16x128xf32>
    %115 = arith.mulf %114, %110 : vector<16x128xf32>
    %116 = arith.index_cast %c3_i32 : i32 to index
    %c0_39 = arith.constant 0 : index
    %c0_40 = arith.constant 0 : index
    %117 = vector.load %arg8[%116, %c0_39, %c0_40] : memref<8x16x128xf32, #tpu.memory_space<vmem>>, vector<1x16x128xf32>
    %118 = vector.shape_cast %117 : vector<1x16x128xf32> to vector<16x128xf32>
    %119 = vector.shape_cast %115 : vector<16x128xf32> to vector<1x16x128xf32>
    tpu.vector_store %arg8[%116, %c0_39, %c0_40], %119 {strides = array<i32>} : memref<8x16x128xf32, #tpu.memory_space<vmem>>, vector<1x16x128xf32>,
    %c4_i32 = arith.constant 4 : i32
    %120 = arith.truncf %115 : vector<16x128xf32> to vector<16x128xbf16>
    %cst_41 = arith.constant dense<0.000000e+00> : vector<16x512xf32>
    %121 = tpu.matmul %120, %13, %cst_41 {dimension_numbers = #tpu.dot_dimension_numbers<[1], [0], [0], [1], [0, 0, 1, 1], [], []>} : vector<16x128xbf16>, vector<128x512xbf16>, vector<16x512xf32> -> vector<16x512xf32>
    %122 = arith.index_cast %c4_i32 : i32 to index
    %c0_42 = arith.constant 0 : index
    %c0_43 = arith.constant 0 : index
    %123 = vector.load %arg13[%122, %c0_42, %c0_43] : memref<8x16x512xf32, #tpu.memory_space<vmem>>, vector<1x16x512xf32>
    %124 = vector.shape_cast %123 : vector<1x16x512xf32> to vector<16x512xf32>
    %125 = arith.addf %124, %121 : vector<16x512xf32>
    %126 = vector.extract_strided_slice %125 {offsets = [0, 0], sizes = [16, 384], strides = [1, 1]} : vector<16x512xf32> to vector<16x384xf32>
    %127 = arith.negf %126 : vector<16x384xf32>
    %128 = math.exp %127 : vector<16x384xf32>
    %cst_44 = arith.constant 1.000000e+00 : f32
    %129 = vector.broadcast %cst_44 : f32 to vector<16x384xf32>
    %130 = arith.addf %129, %128 : vector<16x384xf32>
    %131 = arith.divf %129, %130 : vector<16x384xf32>
    %132 = vector.extract_strided_slice %125 {offsets = [0, 384], sizes = [16, 128], strides = [1, 1]} : vector<16x512xf32> to vector<16x128xf32>
    %133 = math.tanh %132 : vector<16x128xf32>
    %134 = vector.extract_strided_slice %131 {offsets = [0, 0], sizes = [16, 128], strides = [1, 1]} : vector<16x384xf32> to vector<16x128xf32>
    %135 = vector.extract_strided_slice %131 {offsets = [0, 128], sizes = [16, 128], strides = [1, 1]} : vector<16x384xf32> to vector<16x128xf32>
    %136 = vector.extract_strided_slice %131 {offsets = [0, 256], sizes = [16, 128], strides = [1, 1]} : vector<16x384xf32> to vector<16x128xf32>
    %137 = arith.mulf %133, %135 : vector<16x128xf32>
    %138 = arith.mulf %114, %134 : vector<16x128xf32>
    %139 = arith.addf %137, %138 : vector<16x128xf32>
    %140 = math.tanh %139 : vector<16x128xf32>
    %141 = arith.mulf %140, %136 : vector<16x128xf32>
    %142 = arith.index_cast %c4_i32 : i32 to index
    %c0_45 = arith.constant 0 : index
    %c0_46 = arith.constant 0 : index
    %143 = vector.load %arg8[%142, %c0_45, %c0_46] : memref<8x16x128xf32, #tpu.memory_space<vmem>>, vector<1x16x128xf32>
    %144 = vector.shape_cast %143 : vector<1x16x128xf32> to vector<16x128xf32>
    %145 = vector.shape_cast %141 : vector<16x128xf32> to vector<1x16x128xf32>
    tpu.vector_store %arg8[%142, %c0_45, %c0_46], %145 {strides = array<i32>} : memref<8x16x128xf32, #tpu.memory_space<vmem>>, vector<1x16x128xf32>,
    %c5_i32 = arith.constant 5 : i32
    %146 = arith.truncf %141 : vector<16x128xf32> to vector<16x128xbf16>
    %cst_47 = arith.constant dense<0.000000e+00> : vector<16x512xf32>
    %147 = tpu.matmul %146, %13, %cst_47 {dimension_numbers = #tpu.dot_dimension_numbers<[1], [0], [0], [1], [0, 0, 1, 1], [], []>} : vector<16x128xbf16>, vector<128x512xbf16>, vector<16x512xf32> -> vector<16x512xf32>
    %148 = arith.index_cast %c5_i32 : i32 to index
    %c0_48 = arith.constant 0 : index
    %c0_49 = arith.constant 0 : index
    %149 = vector.load %arg13[%148, %c0_48, %c0_49] : memref<8x16x512xf32, #tpu.memory_space<vmem>>, vector<1x16x512xf32>
    %150 = vector.shape_cast %149 : vector<1x16x512xf32> to vector<16x512xf32>
    %151 = arith.addf %150, %147 : vector<16x512xf32>
    %152 = vector.extract_strided_slice %151 {offsets = [0, 0], sizes = [16, 384], strides = [1, 1]} : vector<16x512xf32> to vector<16x384xf32>
    %153 = arith.negf %152 : vector<16x384xf32>
    %154 = math.exp %153 : vector<16x384xf32>
    %cst_50 = arith.constant 1.000000e+00 : f32
    %155 = vector.broadcast %cst_50 : f32 to vector<16x384xf32>
    %156 = arith.addf %155, %154 : vector<16x384xf32>
    %157 = arith.divf %155, %156 : vector<16x384xf32>
    %158 = vector.extract_strided_slice %151 {offsets = [0, 384], sizes = [16, 128], strides = [1, 1]} : vector<16x512xf32> to vector<16x128xf32>
    %159 = math.tanh %158 : vector<16x128xf32>
    %160 = vector.extract_strided_slice %157 {offsets = [0, 0], sizes = [16, 128], strides = [1, 1]} : vector<16x384xf32> to vector<16x128xf32>
    %161 = vector.extract_strided_slice %157 {offsets = [0, 128], sizes = [16, 128], strides = [1, 1]} : vector<16x384xf32> to vector<16x128xf32>
    %162 = vector.extract_strided_slice %157 {offsets = [0, 256], sizes = [16, 128], strides = [1, 1]} : vector<16x384xf32> to vector<16x128xf32>
    %163 = arith.mulf %159, %161 : vector<16x128xf32>
    %164 = arith.mulf %140, %160 : vector<16x128xf32>
    %165 = arith.addf %163, %164 : vector<16x128xf32>
    %166 = math.tanh %165 : vector<16x128xf32>
    %167 = arith.mulf %166, %162 : vector<16x128xf32>
    %168 = arith.index_cast %c5_i32 : i32 to index
    %c0_51 = arith.constant 0 : index
    %c0_52 = arith.constant 0 : index
    %169 = vector.load %arg8[%168, %c0_51, %c0_52] : memref<8x16x128xf32, #tpu.memory_space<vmem>>, vector<1x16x128xf32>
    %170 = vector.shape_cast %169 : vector<1x16x128xf32> to vector<16x128xf32>
    %171 = vector.shape_cast %167 : vector<16x128xf32> to vector<1x16x128xf32>
    tpu.vector_store %arg8[%168, %c0_51, %c0_52], %171 {strides = array<i32>} : memref<8x16x128xf32, #tpu.memory_space<vmem>>, vector<1x16x128xf32>,
    %c6_i32 = arith.constant 6 : i32
    %172 = arith.truncf %167 : vector<16x128xf32> to vector<16x128xbf16>
    %cst_53 = arith.constant dense<0.000000e+00> : vector<16x512xf32>
    %173 = tpu.matmul %172, %13, %cst_53 {dimension_numbers = #tpu.dot_dimension_numbers<[1], [0], [0], [1], [0, 0, 1, 1], [], []>} : vector<16x128xbf16>, vector<128x512xbf16>, vector<16x512xf32> -> vector<16x512xf32>
    %174 = arith.index_cast %c6_i32 : i32 to index
    %c0_54 = arith.constant 0 : index
    %c0_55 = arith.constant 0 : index
    %175 = vector.load %arg13[%174, %c0_54, %c0_55] : memref<8x16x512xf32, #tpu.memory_space<vmem>>, vector<1x16x512xf32>
    %176 = vector.shape_cast %175 : vector<1x16x512xf32> to vector<16x512xf32>
    %177 = arith.addf %176, %173 : vector<16x512xf32>
    %178 = vector.extract_strided_slice %177 {offsets = [0, 0], sizes = [16, 384], strides = [1, 1]} : vector<16x512xf32> to vector<16x384xf32>
    %179 = arith.negf %178 : vector<16x384xf32>
    %180 = math.exp %179 : vector<16x384xf32>
    %cst_56 = arith.constant 1.000000e+00 : f32
    %181 = vector.broadcast %cst_56 : f32 to vector<16x384xf32>
    %182 = arith.addf %181, %180 : vector<16x384xf32>
    %183 = arith.divf %181, %182 : vector<16x384xf32>
    %184 = vector.extract_strided_slice %177 {offsets = [0, 384], sizes = [16, 128], strides = [1, 1]} : vector<16x512xf32> to vector<16x128xf32>
    %185 = math.tanh %184 : vector<16x128xf32>
    %186 = vector.extract_strided_slice %183 {offsets = [0, 0], sizes = [16, 128], strides = [1, 1]} : vector<16x384xf32> to vector<16x128xf32>
    %187 = vector.extract_strided_slice %183 {offsets = [0, 128], sizes = [16, 128], strides = [1, 1]} : vector<16x384xf32> to vector<16x128xf32>
    %188 = vector.extract_strided_slice %183 {offsets = [0, 256], sizes = [16, 128], strides = [1, 1]} : vector<16x384xf32> to vector<16x128xf32>
    %189 = arith.mulf %185, %187 : vector<16x128xf32>
    %190 = arith.mulf %166, %186 : vector<16x128xf32>
    %191 = arith.addf %189, %190 : vector<16x128xf32>
    %192 = math.tanh %191 : vector<16x128xf32>
    %193 = arith.mulf %192, %188 : vector<16x128xf32>
    %194 = arith.index_cast %c6_i32 : i32 to index
    %c0_57 = arith.constant 0 : index
    %c0_58 = arith.constant 0 : index
    %195 = vector.load %arg8[%194, %c0_57, %c0_58] : memref<8x16x128xf32, #tpu.memory_space<vmem>>, vector<1x16x128xf32>
    %196 = vector.shape_cast %195 : vector<1x16x128xf32> to vector<16x128xf32>
    %197 = vector.shape_cast %193 : vector<16x128xf32> to vector<1x16x128xf32>
    tpu.vector_store %arg8[%194, %c0_57, %c0_58], %197 {strides = array<i32>} : memref<8x16x128xf32, #tpu.memory_space<vmem>>, vector<1x16x128xf32>,
    %c7_i32 = arith.constant 7 : i32
    %198 = arith.truncf %193 : vector<16x128xf32> to vector<16x128xbf16>
    %cst_59 = arith.constant dense<0.000000e+00> : vector<16x512xf32>
    %199 = tpu.matmul %198, %13, %cst_59 {dimension_numbers = #tpu.dot_dimension_numbers<[1], [0], [0], [1], [0, 0, 1, 1], [], []>} : vector<16x128xbf16>, vector<128x512xbf16>, vector<16x512xf32> -> vector<16x512xf32>
    %200 = arith.index_cast %c7_i32 : i32 to index
    %c0_60 = arith.constant 0 : index
    %c0_61 = arith.constant 0 : index
    %201 = vector.load %arg13[%200, %c0_60, %c0_61] : memref<8x16x512xf32, #tpu.memory_space<vmem>>, vector<1x16x512xf32>
    %202 = vector.shape_cast %201 : vector<1x16x512xf32> to vector<16x512xf32>
    %203 = arith.addf %202, %199 : vector<16x512xf32>
    %204 = vector.extract_strided_slice %203 {offsets = [0, 0], sizes = [16, 384], strides = [1, 1]} : vector<16x512xf32> to vector<16x384xf32>
    %205 = arith.negf %204 : vector<16x384xf32>
    %206 = math.exp %205 : vector<16x384xf32>
    %cst_62 = arith.constant 1.000000e+00 : f32
    %207 = vector.broadcast %cst_62 : f32 to vector<16x384xf32>
    %208 = arith.addf %207, %206 : vector<16x384xf32>
    %209 = arith.divf %207, %208 : vector<16x384xf32>
    %210 = vector.extract_strided_slice %203 {offsets = [0, 384], sizes = [16, 128], strides = [1, 1]} : vector<16x512xf32> to vector<16x128xf32>
    %211 = math.tanh %210 : vector<16x128xf32>
    %212 = vector.extract_strided_slice %209 {offsets = [0, 0], sizes = [16, 128], strides = [1, 1]} : vector<16x384xf32> to vector<16x128xf32>
    %213 = vector.extract_strided_slice %209 {offsets = [0, 128], sizes = [16, 128], strides = [1, 1]} : vector<16x384xf32> to vector<16x128xf32>
    %214 = vector.extract_strided_slice %209 {offsets = [0, 256], sizes = [16, 128], strides = [1, 1]} : vector<16x384xf32> to vector<16x128xf32>
    %215 = arith.mulf %211, %213 : vector<16x128xf32>
    %216 = arith.mulf %192, %212 : vector<16x128xf32>
    %217 = arith.addf %215, %216 : vector<16x128xf32>
    %218 = math.tanh %217 : vector<16x128xf32>
    %219 = arith.mulf %218, %214 : vector<16x128xf32>
    %220 = arith.index_cast %c7_i32 : i32 to index
    %c0_63 = arith.constant 0 : index
    %c0_64 = arith.constant 0 : index
    %221 = vector.load %arg8[%220, %c0_63, %c0_64] : memref<8x16x128xf32, #tpu.memory_space<vmem>>, vector<1x16x128xf32>
    %222 = vector.shape_cast %221 : vector<1x16x128xf32> to vector<16x128xf32>
    %223 = vector.shape_cast %219 : vector<16x128xf32> to vector<1x16x128xf32>
    tpu.vector_store %arg8[%220, %c0_63, %c0_64], %223 {strides = array<i32>} : memref<8x16x128xf32, #tpu.memory_space<vmem>>, vector<1x16x128xf32>,
    %c8_i32 = arith.constant 8 : i32
    %c0_65 = arith.constant 0 : index
    %c0_66 = arith.constant 0 : index
    %224 = vector.load %arg11[%c0_65, %c0_66] : memref<16x128xf32, #tpu.memory_space<vmem>>, vector<16x128xf32>
    tpu.vector_store %arg11[%c0_65, %c0_66], %219 {strides = array<i32>} : memref<16x128xf32, #tpu.memory_space<vmem>>, vector<16x128xf32>,
    %c0_67 = arith.constant 0 : index
    %c0_68 = arith.constant 0 : index
    %225 = vector.load %arg12[%c0_67, %c0_68] : memref<16x128xf32, #tpu.memory_space<vmem>>, vector<16x128xf32>
    tpu.vector_store %arg12[%c0_67, %c0_68], %218 {strides = array<i32>} : memref<16x128xf32, #tpu.memory_space<vmem>>, vector<16x128xf32>,
    %c0_i32_69 = arith.constant 0 : i32
    %226 = arith.cmpi eq, %arg1, %c0_i32_69 : i32
    %227 = arith.extui %226 : i1 to i32
    %c0_i32_70 = arith.constant 0 : i32
    %228 = arith.cmpi ne, %227, %c0_i32_70 : i32
    scf.if %228 {
      %c0_71 = arith.constant 0 : index
      %c0_72 = arith.constant 0 : index
      %229 = vector.load %arg9[%c0_71, %c0_72] : memref<16x128xf32, #tpu.memory_space<vmem>>, vector<16x128xf32>
      tpu.vector_store %arg9[%c0_71, %c0_72], %219 {strides = array<i32>} : memref<16x128xf32, #tpu.memory_space<vmem>>, vector<16x128xf32>,
      %c0_73 = arith.constant 0 : index
      %c0_74 = arith.constant 0 : index
      %230 = vector.load %arg10[%c0_73, %c0_74] : memref<16x128xf32, #tpu.memory_space<vmem>>, vector<16x128xf32>
      tpu.vector_store %arg10[%c0_73, %c0_74], %218 {strides = array<i32>} : memref<16x128xf32, #tpu.memory_space<vmem>>, vector<16x128xf32>,
    } else {
    }
    return
  }
  func.func @transform_0(%arg0: i32, %arg1: i32) -> (i32, i32, i32) {
    %c0_i32 = arith.constant 0 : i32
    %c0_i32_0 = arith.constant 0 : i32
    return %arg1, %arg0, %c0_i32 : i32, i32, i32
  }
  func.func @transform_1(%arg0: i32, %arg1: i32) -> (i32, i32) {
    %c0_i32 = arith.constant 0 : i32
    %c0_i32_0 = arith.constant 0 : i32
    %c0_i32_1 = arith.constant 0 : i32
    return %c0_i32, %c0_i32_0 : i32, i32
  }
  func.func @transform_2(%arg0: i32, %arg1: i32) -> (i32, i32) {
    %c0_i32 = arith.constant 0 : i32
    %c0_i32_0 = arith.constant 0 : i32
    %c0_i32_1 = arith.constant 0 : i32
    return %c0_i32, %c0_i32_0 : i32, i32
  }
  func.func @transform_3(%arg0: i32, %arg1: i32) -> (i32, i32) {
    %c0_i32 = arith.constant 0 : i32
    %c0_i32_0 = arith.constant 0 : i32
    %c0_i32_1 = arith.constant 0 : i32
    return %c0_i32, %c0_i32_0 : i32, i32
  }
  func.func @transform_4(%arg0: i32, %arg1: i32) -> (i32, i32) {
    %c0_i32 = arith.constant 0 : i32
    %c0_i32_0 = arith.constant 0 : i32
    return %arg0, %c0_i32 : i32, i32
  }
  func.func @transform_5(%arg0: i32, %arg1: i32) -> (i32, i32) {
    %c0_i32 = arith.constant 0 : i32
    %c0_i32_0 = arith.constant 0 : i32
    return %arg0, %c0_i32 : i32, i32
  }
  func.func @transform_6(%arg0: i32, %arg1: i32) -> (i32, i32, i32) {
    %c0_i32 = arith.constant 0 : i32
    %c0_i32_0 = arith.constant 0 : i32
    return %arg1, %arg0, %c0_i32 : i32, i32, i32
  }
  func.func @transform_7(%arg0: i32, %arg1: i32) -> (i32, i32) {
    %c0_i32 = arith.constant 0 : i32
    %c0_i32_0 = arith.constant 0 : i32
    return %arg0, %c0_i32 : i32, i32
  }
  func.func @transform_8(%arg0: i32, %arg1: i32) -> (i32, i32) {
    %c0_i32 = arith.constant 0 : i32
    %c0_i32_0 = arith.constant 0 : i32
    return %arg0, %c0_i32 : i32, i32
  }
}

</mosaic_0001>

<bundles_post_ra>
// kernel: tpu_custom_call.1
= control target key start
LH: loop header
LB: loop body
LE: loop exit
PB: predicated region body
PF: predicated region fallthrough
CT: control target
= control target key end

     0   :  { %14 = vsyncpa [#allocation6], 0  ;;  %s3471_s0 = inlined_call_operand.hbm [shape: f32[8,16,16], index: 0, kind: input, shape index: {}]   ;;  %s3472_s1 = inlined_call_operand.hbm [shape: bf16[16,512], index: 1, kind: input, shape index: {}]   ;;  %s3473_s2 = inlined_call_operand.hbm [shape: bf16[128,512], index: 2, kind: input, shape index: {}]   ;;  %s3474_s3 = inlined_call_operand.vmem [shape: f32[1,512], index: 3, kind: input, shape index: {}]   ;;  %s3475_s4 = inlined_call_operand.hbm [shape: f32[16,128], index: 4, kind: input, shape index: {}]   ;;  %s3476_s5 = inlined_call_operand.hbm [shape: f32[16,128], index: 5, kind: input, shape index: {}]   ;;  %s3477_s6 = inlined_call_operand.hbm [shape: f32[8,16,128], index: 6, kind: output, shape index: {0}]   ;;  %s3478_s7 = inlined_call_operand.hbm [shape: f32[16,128], index: 7, kind: output, shape index: {1}]   ;;  %s3479_s8 = inlined_call_operand.hbm [shape: f32[16,128], index: 8, kind: output, shape index: {2}]  }
   0x1   :  { %15 = vsyncpa [#allocation9], 0 }
   0x2   :  { %16 = vsyncpa [#allocation12], 0 }
   0x3   :  { %17 = vsyncpa [#allocation7], 0 }
   0x4   :  { %18 = vsyncpa [#allocation16], 0  ;;  %s2614_s27 = smov [#allocation8]  }
   0x5   :  { %s36_s28 = sshll.u32 %s2614_s27, 4  ;;  %s37_s28 = int_to_ptr.vmem [resolvable:$true] %s36_s28 }
   0x6   :  { %s2452_s29 = scalar_lea.vmem %s37_s28, 512  ;;  %p2457_p1 = scmp.lt.s32.totalorder %s37_s28, %s37_s28 }
   0x7   :  { %p2453_p0 = scmp.ne.s32.totalorder %s37_s28, %s2452_s29  ;;  %p2458_p2 = scmp.lt.s32.totalorder %s2452_s29, %s2452_s29 }
   0x9   :  { %p2459_p3 = por %p2458_p2, %p2457_p1 }
   0xb   :  { %p2460_p4 = pnand %p2459_p3, %p2453_p0 }
   0xd   :  { %2463 = shalt.err (!%p2460_p4)
}
   0xe   :  { %s2615_s30 = smov 256   ;;  %s2616_s9 = smov 16  }
   0xf   :  { %42 = dma.hbm_to_vmem [thread:$0]  %s3472_s1, 512, %s37_s28, [#allocation9], %s2615_s30, %s2615_s30, %s2616_s9  }
  0x10   :  { %s2617_s12 = smov [#allocation11]   ;;  %s2618_s14 = smov [#allocation5]  }
  0x11   :  { %s62_s13 = sshll.u32 %s2617_s12, 4  ;;  %s24_s15 = sshll.u32 %s2618_s14, 4  ;;  %s63_s13 = int_to_ptr.vmem [resolvable:$true] %s62_s13  ;;  %s25_s15 = int_to_ptr.vmem [resolvable:$true] %s24_s15 }
  0x12   :  { %s2472_s16 = scalar_lea.vmem %s63_s13, 256  ;;  %p2477_p6 = scmp.lt.s32.totalorder %s63_s13, %s63_s13 }
  0x13   :  { %p2473_p5 = scmp.ne.s32.totalorder %s63_s13, %s2472_s16  ;;  %p2478_p7 = scmp.lt.s32.totalorder %s2472_s16, %s2472_s16 }
  0x15   :  { %p2479_p8 = por %p2478_p7, %p2477_p6 }
  0x17   :  { %p2480_p9 = pnand %p2479_p8, %p2473_p5 }
  0x19   :  { %2483 = shalt.err (!%p2480_p9)
}
  0x1a   :  { %s2619_s17 = smov 128   ;;  %s2620_s18 = smov 8  }
  0x1b   :  { %68 = dma.hbm_to_vmem [thread:$0]  %s3475_s4, 256, %s63_s13, [#allocation12], %s2619_s17, %s2619_s17, %s2620_s18  }
  0x1c   :  { %s2492_s1 = scalar_lea.vmem %s25_s15, 2048  ;;  %p2497_p11 = scmp.lt.s32.totalorder %s25_s15, %s25_s15 }
  0x1d   :  { %p2493_p10 = scmp.ne.s32.totalorder %s25_s15, %s2492_s1  ;;  %p2498_p12 = scmp.lt.s32.totalorder %s2492_s1, %s2492_s1 }
  0x1f   :  { %p2499_p13 = por %p2498_p12, %p2497_p11 }
  0x21   :  { %p2500_p0 = pnand %p2499_p13, %p2493_p10 }
  0x23   :  { %2503 = shalt.err (!%p2500_p0)
}
  0x24   :  { %30 = dma.hbm_to_vmem [thread:$0]  %s3471_s0, 2048, %s25_s15, [#allocation6], %s2619_s17, %s2619_s17, %s2620_s18  }
  0x25   :  { %s2621_s23 = smov [#allocation10]   ;;  %s2622_s25 = smov [#allocation13]  }
  0x26   :  { %s48_s24 = sshll.u32 %s2621_s23, 4  ;;  %s74_s4 = sshll.u32 %s2622_s25, 4  ;;  %s49_s24 = int_to_ptr.vmem [resolvable:$true] %s48_s24  ;;  %s75_s4 = int_to_ptr.vmem [resolvable:$true] %s74_s4 }
  0x27   :  { %s2512_s26 = scalar_lea.vmem %s49_s24, 4096  ;;  %p2517_p2 = scmp.lt.s32.totalorder %s49_s24, %s49_s24 }
  0x28   :  { %p2513_p1 = scmp.ne.s32.totalorder %s49_s24, %s2512_s26  ;;  %p2518_p3 = scmp.lt.s32.totalorder %s2512_s26, %s2512_s26 }
  0x2a   :  { %p2519_p4 = por %p2518_p3, %p2517_p2 }
  0x2c   :  { %p2520_p5 = pnand %p2519_p4, %p2513_p1 }
  0x2e   :  { %2523 = shalt.err (!%p2520_p5)
}
  0x2f   :  { %54 = dma.hbm_to_vmem [thread:$0]  %s3473_s2, 4096, %s49_s24, [#allocation9], %s2615_s30, %s2615_s30, %s2616_s9  }
  0x30   :  { %s2532_s0 = scalar_lea.vmem %s75_s4, 256  ;;  %p2537_p7 = scmp.lt.s32.totalorder %s75_s4, %s75_s4 }
  0x31   :  { %p2533_p6 = scmp.ne.s32.totalorder %s75_s4, %s2532_s0  ;;  %p2538_p8 = scmp.lt.s32.totalorder %s2532_s0, %s2532_s0 }
  0x33   :  { %p2539_p9 = por %p2538_p8, %p2537_p7 }
  0x35   :  { %p2540_p10 = pnand %p2539_p9, %p2533_p6 }
  0x37   :  { %2543 = shalt.err (!%p2540_p10)
}
  0x38   :  { %80 = dma.hbm_to_vmem [thread:$0]  %s3476_s5, 256, %s75_s4, [#allocation12], %s2619_s17, %s2619_s17, %s2620_s18  }
  0x39   :  { %2604 = dma.done.wait [#allocation6], 2048  }
  0x3a   :  { %2605 = vsyncadd [#allocation6], 4294965248 }
  0x3b   :  { %2606 = dma.done.wait [#allocation9], 4608  }
  0x3c   :  { %2607 = vsyncadd [#allocation9], 4294962688 }
  0x3d   :  { %2608 = dma.done.wait [#allocation12], 512  }
  0x3e   :  { %2609 = vsyncadd [#allocation12], 4294966784  ;;  %v3480_v0 = vmov 0   ;;  %v2102_v1 = vld [vmem:[#allocation8 + $0x4] ss:$16 sps:$4 sm:$0xff]   ;;  %v110_v6 = vld [vmem:[#allocation5 + $0x8] sm:$0xff] }
  0x3f   :  { %236 = vmatprep.mubr.bf16.mxu0 %v3480_v0  ;;  %349 = vmatprep.mubr.bf16.mxu1 %v3480_v0  ;;  %v2104_v2 = vld [vmem:[#allocation8 + $0xc] ss:$16 sps:$4 sm:$0xff]   ;;  %v2106_v3 = vld [vmem:[#allocation8] ss:$16 sps:$4 sm:$0xff]   ;;  %v2107_v4 = vld [vmem:[#allocation8 + $0x8] ss:$16 sps:$4 sm:$0xff]  }
  0x40   :  { %218 = vmatprep.subr.bf16.mxu0 %v2102_v1  ;;  %v109_v5 = vld [vmem:[#allocation5] sm:$0xff]  ;;  %331 = vmatprep.subr.bf16.mxu1 %v2104_v2  ;;  %vm179_vm0 = vcmask 130048   ;;  %v111_v10 = vld [vmem:[#allocation5 + $0x10] sm:$0xff]  ;;  %v112_v12 = vld [vmem:[#allocation5 + $0x18] sm:$0xff]  ;;  %v139_v1 = vlaneseq  ;;  %s2625_s9 = smov [#allocation14]   ;;  %s2626_s12 = smov [#allocation17]  }
  0x41   :  { %219 = vmatpush1.bf16.msra.mxu0 %v2106_v3  ;;  %332 = vmatpush1.bf16.msra.mxu1 %v2107_v4  ;;  %v125_v7 = vpack.c.bf16 %v110_v6, %v109_v5  ;;  %v2704_v8 = vld [vmem:[#allocation10 + $0xe4] ss:$16 sps:$4 sm:$0xff]   ;;  %v2706_v9 = vld [vmem:[#allocation10 + $0xe0] ss:$16 sps:$4 sm:$0xff]   ;;  %v2721_v15 = vld [vmem:[#allocation10 + $0xec] ss:$16 sps:$4 sm:$0xff]   ;;  %v126_v17 = vpack.c.bf16 %v112_v12, %v111_v10 }
  0x42   :  { %691 = vmatprep.subr.bf16.mxu0 %v2704_v8  ;;  %v2709_v11 = vld [vmem:[#allocation10 + $0xc4] ss:$16 sps:$4 sm:$0xff]   ;;  %v2715_v13 = vld [vmem:[#allocation10 + $0xc0] ss:$16 sps:$4 sm:$0xff]   ;;  %v2723_v16 = vld [vmem:[#allocation10 + $0xe8] ss:$16 sps:$4 sm:$0xff]   ;;  %734 = vmatprep.subr.bf16.mxu1 %v2721_v15 }
  0x43   :  { %v2717_v14 = vld [vmem:[#allocation10 + $0xa4] ss:$16 sps:$4 sm:$0xff]   ;;  %v2728_v18 = vld [vmem:[#allocation10 + $0xcc] ss:$16 sps:$4 sm:$0xff]   ;;  %v2731_v19 = vld [vmem:[#allocation10 + $0xa0] ss:$16 sps:$4 sm:$0xff]  }
  0x44   :  { %1993 = vmatmul.mubr.msk.bf16.vlgmr.msra.gmra.mxu0 %vm179_vm0, %v125_v7  ;;  %2001 = vmatmul.mubr.msk.bf16.vlgmr.msra.gmra.mxu1 %vm179_vm0, %v125_v7  ;;  %v2733_v20 = vld [vmem:[#allocation10 + $0xc8] ss:$16 sps:$4 sm:$0xff]   ;;  %v2735_v21 = vld [vmem:[#allocation10 + $0x84] ss:$16 sps:$4 sm:$0xff]   ;;  %v2742_v24 = vld [vmem:[#allocation10 + $0x80] ss:$16 sps:$4 sm:$0xff]  }
  0x45   :  { %692 = vmatpush1.bf16.msra.mxu0 %v2706_v9  ;;  %246 = vmatprep.mubr.bf16.mxu0 %v3480_v0  ;;  %v113_v22 = vld [vmem:[#allocation5 + $0x20] sm:$0xff]  ;;  %v114_v23 = vld [vmem:[#allocation5 + $0x28] sm:$0xff]  ;;  %v115_v34 = vld [vmem:[#allocation5 + $0x30] sm:$0xff]  ;;  %v140_v2 = vshrl.u32 %v139_v1, 7  ;;  %s1944_s11 = sshll.u32 %s2625_s9, 4  ;;  %s1968_s13 = sshll.u32 %s2626_s12, 4  ;;  %s1945_s11 = int_to_ptr.vmem [resolvable:$true] %s1944_s11  ;;  %s1969_s13 = int_to_ptr.vmem [resolvable:$true] %s1968_s13 }
  0x46   :  { %359 = vmatprep.mubr.bf16.mxu1 %v3480_v0  ;;  %693 = vmatprep.subr.bf16.mxu0 %v2709_v11  ;;  %v2744_v25 = vld [vmem:[#allocation10 + $0xac] ss:$16 sps:$4 sm:$0xff]   ;;  %v2748_v26 = vld [vmem:[#allocation10 + $0xa8] ss:$16 sps:$4 sm:$0xff]   ;;  %v2751_v27 = vld [vmem:[#allocation10 + $0x64] ss:$16 sps:$4 sm:$0xff]   ;;  %v127_v28 = vpack.c.bf16 %v114_v23, %v113_v22 }
  0x47   :  { %735 = vmatpush1.bf16.msra.mxu1 %v2723_v16  ;;  %v2754_v29 = vld [vmem:[#allocation10 + $0x8c] ss:$16 sps:$4 sm:$0xff]   ;;  %v2756_v30 = vld [vmem:[#allocation10 + $0x60] ss:$16 sps:$4 sm:$0xff]   ;;  %v2760_v31 = vld [vmem:[#allocation10 + $0x88] ss:$16 sps:$4 sm:$0xff]  }
  0x48   :  { %736 = vmatprep.subr.bf16.mxu1 %v2728_v18  ;;  %v2763_v32 = vld [vmem:[#allocation10 + $0x44] ss:$16 sps:$4 sm:$0xff]   ;;  %v2766_v33 = vld [vmem:[#allocation10 + $0x6c] ss:$16 sps:$4 sm:$0xff]   ;;  %v2772_v36 = vld [vmem:[#allocation10 + $0x40] ss:$16 sps:$4 sm:$0xff]  }
  0x49   :  { %694 = vmatpush1.bf16.msra.mxu0 %v2715_v13  ;;  %v116_v35 = vld [vmem:[#allocation5 + $0x38] sm:$0xff]  ;;  %v2774_v37 = vld [vmem:[#allocation10 + $0x24] ss:$16 sps:$4 sm:$0xff]   ;;  %v2785_v41 = vld [vmem:[#allocation10 + $0x20] ss:$16 sps:$4 sm:$0xff]   ;;  %v141_v7 = vsub.s32 0, %v140_v2 }
  0x4a   :  { %695 = vmatprep.subr.bf16.mxu0 %v2717_v14  ;;  %v2778_v38 = vld [vmem:[#allocation10 + $0x68] ss:$16 sps:$4 sm:$0xff]   ;;  %v2782_v39 = vld [vmem:[#allocation10 + $0x4c] ss:$16 sps:$4 sm:$0xff]   ;;  %v128_v40 = vpack.c.bf16 %v116_v35, %v115_v34  ;;  %v2792_v43 = vld [vmem:[#allocation10 + $0x4] ss:$16 sps:$4 sm:$0xff]  }
  0x4b   :  { %737 = vmatpush1.bf16.msra.mxu1 %v2733_v20  ;;  %v2788_v42 = vld [vmem:[#allocation10 + $0x48] ss:$16 sps:$4 sm:$0xff]   ;;  %v2794_v44 = vld [vmem:[#allocation10 + $0x2c] ss:$16 sps:$4 sm:$0xff]   ;;  %v117_v45 = vld [vmem:[#allocation5 + $0x40] sm:$0xff]  ;;  %v149_v10 = vsub.s32 2, %v140_v2 }
  0x4c   :  { %1994 = vmatmul.mubr.msk.bf16.gmra.mxu0 %vm179_vm0, %v126_v17  ;;  %2002 = vmatmul.mubr.msk.bf16.gmra.mxu1 %vm179_vm0, %v126_v17  ;;  %v118_v46 = vld [vmem:[#allocation5 + $0x48] sm:$0xff]  ;;  %v2802_v47 = vld [vmem:[#allocation10] ss:$16 sps:$4 sm:$0xff]   ;;  %v120_v53 = vld [vmem:[#allocation5 + $0x58] sm:$0xff]  ;;  %v145_v23 = vsub.s32 1, %v140_v2 }
  0x4d   :  { %256 = vmatprep.mubr.bf16.mxu0 %v3480_v0  ;;  %369 = vmatprep.mubr.bf16.mxu1 %v3480_v0  ;;  %v2804_v48 = vld [vmem:[#allocation10 + $0x28] ss:$16 sps:$4 sm:$0xff]   ;;  %v2808_v49 = vld [vmem:[#allocation10 + $0xc] ss:$16 sps:$4 sm:$0xff]   ;;  %v129_v50 = vpack.c.bf16 %v118_v46, %v117_v45  ;;  %v119_v52 = vld [vmem:[#allocation5 + $0x50] sm:$0xff] }
  0x4e   :  { %696 = vmatpush1.bf16.msra.mxu0 %v2731_v19  ;;  %738 = vmatprep.subr.bf16.mxu1 %v2744_v25  ;;  %v2812_v51 = vld [vmem:[#allocation10 + $0x8] ss:$16 sps:$4 sm:$0xff]   ;;  %v130_v54 = vpack.c.bf16 %v120_v53, %v119_v52  ;;  %v121_v55 = vld [vmem:[#allocation5 + $0x60] sm:$0xff]  ;;  %v123_v58 = vld [vmem:[#allocation5 + $0x70] sm:$0xff] }
  0x4f   :  { %697 = vmatprep.subr.bf16.mxu0 %v2735_v21  ;;  %739 = vmatpush1.bf16.msra.mxu1 %v2748_v26  ;;  %v122_v56 = vld [vmem:[#allocation5 + $0x68] sm:$0xff]  ;;  %v124_v59 = vld [vmem:[#allocation5 + $0x78] sm:$0xff]  ;;  %v101_v61 = vld [vmem:[#allocation11] sm:$0xff] }
  0x50   :  { %740 = vmatprep.subr.bf16.mxu1 %v2754_v29  ;;  %v131_v57 = vpack.c.bf16 %v122_v56, %v121_v55  ;;  %v132_v60 = vpack.c.bf16 %v124_v59, %v123_v58  ;;  %v102_v62 = vld [vmem:[#allocation11 + $0x8] sm:$0xff]  ;;  %v137_v12 = vld [vmem:[%s3474_s3] sm:$0xf]  ;;  %s2624_s3 = smov [#allocation15]  }
  0x51   :  { %v530_v63 = vpack.c.bf16 %v102_v62, %v101_v61  ;;  %v2889_v45 = vrot.slane %v137_v12, %v149_v10  ;;  %v2891_v52 = vrot.slane %v137_v12, %v145_v23  ;;  %s1956_s30 = sshll.u32 %s2624_s3, 4  ;;  %s1957_s30 = int_to_ptr.vmem [resolvable:$true] %s1956_s30 }
  0x52   :  { %698 = vmatpush1.bf16.msra.mxu0 %v2742_v24  ;;  %s2544_s14 = scalar_lea.vmem %s1957_s30, 256  ;;  %p2549_p12 = scmp.lt.s32.totalorder %s1957_s30, %s1957_s30 }
  0x53   :  { %699 = vmatprep.subr.bf16.mxu0 %v2751_v27  ;;  %741 = vmatpush1.bf16.msra.mxu1 %v2760_v31  ;;  %p2545_p11 = scmp.ne.s32.totalorder %s1957_s30, %s2544_s14  ;;  %p2550_p13 = scmp.lt.s32.totalorder %s2544_s14, %s2544_s14 }
  0x54   :  { %1995 = vmatmul.mubr.msk.bf16.gmra.mxu0 %vm179_vm0, %v127_v28  ;;  %2003 = vmatmul.mubr.msk.bf16.gmra.mxu1 %vm179_vm0, %v127_v28  ;;  %v153_v28 = vsub.s32 3, %v140_v2 }
  0x55   :  { %266 = vmatprep.mubr.bf16.mxu0 %v3480_v0  ;;  %379 = vmatprep.mubr.bf16.mxu1 %v3480_v0  ;;  %p2551_p0 = por %p2550_p13, %p2549_p12 }
  0x56   :  { %700 = vmatpush1.bf16.msra.mxu0 %v2756_v30  ;;  %742 = vmatprep.subr.bf16.mxu1 %v2766_v33  ;;  %v2893_v53 = vrot.slane %v137_v12, %v153_v28 }
  0x57   :  { %701 = vmatprep.subr.bf16.mxu0 %v2763_v32  ;;  %743 = vmatpush1.bf16.msra.mxu1 %v2778_v38  ;;  %p2552_p1 = pnand %p2551_p0, %p2545_p11 }
  0x58   :  { %744 = vmatprep.subr.bf16.mxu1 %v2782_v39 }
  0x5a   :  { %702 = vmatpush1.bf16.msra.mxu0 %v2772_v36 }
  0x5b   :  { %703 = vmatprep.subr.bf16.mxu0 %v2774_v37  ;;  %745 = vmatpush1.bf16.msra.mxu1 %v2788_v42 }
  0x5c   :  { %1996 = vmatmul.mubr.msk.bf16.gmra.mxu0 %vm179_vm0, %v128_v40  ;;  %2004 = vmatmul.mubr.msk.bf16.gmra.mxu1 %vm179_vm0, %v128_v40  ;;  %v2887_v40 = vrot.slane %v137_v12, %v141_v7 }
  0x5d   :  { %276 = vmatprep.mubr.bf16.mxu0 %v3480_v0  ;;  %389 = vmatprep.mubr.bf16.mxu1 %v3480_v0 }
  0x5e   :  { %704 = vmatpush1.bf16.msra.mxu0 %v2785_v41  ;;  %746 = vmatprep.subr.bf16.mxu1 %v2794_v44 }
  0x5f   :  { %705 = vmatprep.subr.bf16.mxu0 %v2792_v43  ;;  %747 = vmatpush1.bf16.msra.mxu1 %v2804_v48 }
  0x60   :  { %748 = vmatprep.subr.bf16.mxu1 %v2808_v49 }
  0x62   :  { %706 = vmatpush1.bf16.msra.mxu0 %v2802_v47 }
  0x63   :  { %844 = vmatprep.subr.bf16.mxu0 %v2704_v8  ;;  %749 = vmatpush1.bf16.msra.mxu1 %v2812_v51 }
  0x64   :  { %1997 = vmatmul.mubr.msk.bf16.gmra.mxu0 %vm179_vm0, %v129_v50  ;;  %2005 = vmatmul.mubr.msk.bf16.gmra.mxu1 %vm179_vm0, %v129_v50 }
  0x65   :  { %286 = vmatprep.mubr.bf16.mxu0 %v3480_v0  ;;  %399 = vmatprep.mubr.bf16.mxu1 %v3480_v0 }
  0x66   :  { %887 = vmatprep.subr.bf16.mxu1 %v2721_v15 }
  0x6c   :  { %1998 = vmatmul.mubr.msk.bf16.gmra.mxu0 %vm179_vm0, %v130_v54  ;;  %2006 = vmatmul.mubr.msk.bf16.gmra.mxu1 %vm179_vm0, %v130_v54 }
  0x6d   :  { %296 = vmatprep.mubr.bf16.mxu0 %v3480_v0  ;;  %409 = vmatprep.mubr.bf16.mxu1 %v3480_v0 }
  0x74   :  { %1999 = vmatmul.mubr.msk.bf16.gmra.mxu0 %vm179_vm0, %v131_v57  ;;  %2007 = vmatmul.mubr.msk.bf16.gmra.mxu1 %vm179_vm0, %v131_v57 }
  0x75   :  { %306 = vmatprep.mubr.bf16.mxu0 %v3480_v0  ;;  %419 = vmatprep.mubr.bf16.mxu1 %v3480_v0 }
  0x7c   :  { %2000 = vmatmul.mubr.msk.bf16.gmra.mxu0 %vm179_vm0, %v132_v60  ;;  %2008 = vmatmul.mubr.msk.bf16.gmra.mxu1 %vm179_vm0, %v132_v60 }
  0x7d   :  { %723 = vmatprep.mubr.bf16.mxu0 %v3480_v0  ;;  %766 = vmatprep.mubr.bf16.mxu1 %v3480_v0 }
  0x84   :  { %724 = vmatmul.mubr.bf16.vlgmr.msra.gmra.mxu0 %v530_v63  ;;  %767 = vmatmul.mubr.bf16.vlgmr.msra.gmra.mxu1 %v530_v63 }
  0x85   :  { %845 = vmatpush1.bf16.msra.mxu0 %v2706_v9  ;;  %888 = vmatpush1.bf16.msra.mxu1 %v2723_v16 }
  0x86   :  { %846 = vmatprep.subr.bf16.mxu0 %v2709_v11  ;;  %889 = vmatprep.subr.bf16.mxu1 %v2728_v18 }
  0x87   :  { %876 = vmatprep.mubr.bf16.mxu0 %v3480_v0  ;;  %919 = vmatprep.mubr.bf16.mxu1 %v3480_v0 }
  0x89   :  { %847 = vmatpush1.bf16.msra.mxu0 %v2715_v13  ;;  %890 = vmatpush1.bf16.msra.mxu1 %v2733_v20 }
  0x8a   :  { %848 = vmatprep.subr.bf16.mxu0 %v2717_v14  ;;  %891 = vmatprep.subr.bf16.mxu1 %v2744_v25 }
  0x8d   :  { %849 = vmatpush1.bf16.msra.mxu0 %v2731_v19  ;;  %892 = vmatpush1.bf16.msra.mxu1 %v2748_v26 }
  0x8e   :  { %850 = vmatprep.subr.bf16.mxu0 %v2735_v21  ;;  %893 = vmatprep.subr.bf16.mxu1 %v2754_v29 }
  0x91   :  { %851 = vmatpush1.bf16.msra.mxu0 %v2742_v24  ;;  %894 = vmatpush1.bf16.msra.mxu1 %v2760_v31 }
  0x92   :  { %852 = vmatprep.subr.bf16.mxu0 %v2751_v27  ;;  %895 = vmatprep.subr.bf16.mxu1 %v2766_v33 }
  0x95   :  { %853 = vmatpush1.bf16.msra.mxu0 %v2756_v30  ;;  %896 = vmatpush1.bf16.msra.mxu1 %v2778_v38 }
  0x96   :  { %854 = vmatprep.subr.bf16.mxu0 %v2763_v32  ;;  %897 = vmatprep.subr.bf16.mxu1 %v2782_v39 }
  0x99   :  { %855 = vmatpush1.bf16.msra.mxu0 %v2772_v36  ;;  %898 = vmatpush1.bf16.msra.mxu1 %v2788_v42 }
  0x9a   :  { %856 = vmatprep.subr.bf16.mxu0 %v2774_v37  ;;  %899 = vmatprep.subr.bf16.mxu1 %v2794_v44 }
  0x9d   :  { %857 = vmatpush1.bf16.msra.mxu0 %v2785_v41  ;;  %900 = vmatpush1.bf16.msra.mxu1 %v2804_v48 }
  0x9e   :  { %858 = vmatprep.subr.bf16.mxu0 %v2792_v43  ;;  %901 = vmatprep.subr.bf16.mxu1 %v2808_v49 }
  0xa1   :  { %859 = vmatpush1.bf16.msra.mxu0 %v2802_v47  ;;  %902 = vmatpush1.bf16.msra.mxu1 %v2812_v51 }
  0xa2   :  { %999 = vmatprep.subr.bf16.mxu0 %v2704_v8  ;;  %1042 = vmatprep.subr.bf16.mxu1 %v2721_v15 }
 0x104   :  { %v2868_v3 = vpop.f32.mrf.mxu0  ;;  %v2870_v4 = vpop.f32.mrf.mxu1 }
 0x106   :  { %v2872_v5 = vpop.f32.mrf.mxu0  ;;  %v2874_v6 = vpop.f32.mrf.mxu1 }
 0x108   :  { %v2879_v17 = vpop.f32.mrf.mxu0  ;;  %v2881_v22 = vpop.f32.mrf.mxu1 }
 0x10a   :  { %v2883_v34 = vpop.f32.mrf.mxu0  ;;  %v2885_v35 = vpop.f32.mrf.mxu1 }
 0x10c   :  { %v248_v46 = vpop.f32.mrf.mxu0  ;;  %v361_v50 = vpop.f32.mrf.mxu1 }
 0x10d   :  { %v2896_v54 = vadd.f32 %v248_v46, %v2887_v40  ;;  %v2899_v55 = vadd.f32 %v361_v50, %v2889_v45 }
 0x10e   :  { %v250_v56 = vpop.f32.mrf.mxu0  ;;  %v363_v57 = vpop.f32.mrf.mxu1 }
 0x10f   :  { %v2902_v58 = vadd.f32 %v250_v56, %v2891_v52  ;;  %v2905_v59 = vadd.f32 %v363_v57, %v2893_v53 }
 0x110   :  { %v252_v60 = vpop.f32.mrf.mxu0  ;;  %v365_v61 = vpop.f32.mrf.mxu1 }
 0x111   :  { %3482 = vst [vmem:[#allocation23_spill] sm:$0xff] %v2905_v59  ;;  %v2908_v62 = vadd.f32 %v252_v60, %v2887_v40  ;;  %v2911_v63 = vadd.f32 %v365_v61, %v2889_v45 }
 0x112   :  { %v254_v1 = vpop.f32.mrf.mxu0  ;;  %v367_v2 = vpop.f32.mrf.mxu1 }
 0x113   :  { %3483 = vst [vmem:[#allocation24_spill] sm:$0xff] %v2911_v63  ;;  %v2914_v7 = vadd.f32 %v254_v1, %v2891_v52  ;;  %v2917_v10 = vadd.f32 %v367_v2, %v2893_v53 }
 0x114   :  { %v258_v12 = vpop.f32.mrf.mxu0  ;;  %v371_v23 = vpop.f32.mrf.mxu1 }
 0x115   :  { %3484 = vst [vmem:[#allocation25_spill] sm:$0xff] %v2917_v10  ;;  %v2920_v28 = vadd.f32 %v258_v12, %v2887_v40  ;;  %v2923_v46 = vadd.f32 %v371_v23, %v2889_v45 }
 0x116   :  { %v260_v50 = vpop.f32.mrf.mxu0  ;;  %v373_v56 = vpop.f32.mrf.mxu1 }
 0x117   :  { %3485 = vst [vmem:[#allocation26_spill] sm:$0xff] %v2920_v28  ;;  %3486 = vst [vmem:[#allocation27_spill] sm:$0xff] %v2923_v46  ;;  %v2926_v57 = vadd.f32 %v260_v50, %v2891_v52  ;;  %v2929_v60 = vadd.f32 %v373_v56, %v2893_v53 }
 0x118   :  { %v262_v61 = vpop.f32.mrf.mxu0  ;;  %v375_v1 = vpop.f32.mrf.mxu1 }
 0x119   :  { %3487 = vst [vmem:[#allocation28_spill] sm:$0xff] %v2926_v57  ;;  %3488 = vst [vmem:[#allocation29_spill] sm:$0xff] %v2929_v60  ;;  %v2932_v2 = vadd.f32 %v262_v61, %v2887_v40  ;;  %v2935_v0 = vadd.f32 %v375_v1, %v2889_v45 }
 0x11a   :  { %v264_v12 = vpop.f32.mrf.mxu0  ;;  %v377_v28 = vpop.f32.mrf.mxu1 }
 0x11b   :  { %3489 = vst [vmem:[#allocation30_spill] sm:$0xff] %v2932_v2  ;;  %3490 = vst [vmem:[#allocation31_spill] sm:$0xff] %v2935_v0  ;;  %v2938_v23 = vadd.f32 %v264_v12, %v2891_v52  ;;  %v2941_v46 = vadd.f32 %v377_v28, %v2893_v53 }
 0x11c   :  { %v268_v50 = vpop.f32.mrf.mxu0  ;;  %v381_v57 = vpop.f32.mrf.mxu1 }
 0x11d   :  { %3491 = vst [vmem:[#allocation32_spill] sm:$0xff] %v2938_v23  ;;  %3492 = vst [vmem:[#allocation33_spill] sm:$0xff] %v2941_v46  ;;  %v2944_v56 = vadd.f32 %v268_v50, %v2887_v40  ;;  %v2947_v60 = vadd.f32 %v381_v57, %v2889_v45 }
 0x11e   :  { %v270_v61 = vpop.f32.mrf.mxu0  ;;  %v383_v2 = vpop.f32.mrf.mxu1 }
 0x11f   :  { %3493 = vst [vmem:[#allocation34_spill] sm:$0xff] %v2944_v56  ;;  %3494 = vst [vmem:[#allocation35_spill] sm:$0xff] %v2947_v60  ;;  %v2950_v1 = vadd.f32 %v270_v61, %v2891_v52  ;;  %v2953_v0 = vadd.f32 %v383_v2, %v2893_v53 }
 0x120   :  { %v272_v12 = vpop.f32.mrf.mxu0  ;;  %v385_v23 = vpop.f32.mrf.mxu1 }
 0x121   :  { %3495 = vst [vmem:[#allocation36_spill] sm:$0xff] %v2950_v1  ;;  %3496 = vst [vmem:[#allocation37_spill] sm:$0xff] %v2953_v0  ;;  %v2956_v28 = vadd.f32 %v272_v12, %v2887_v40  ;;  %v2959_v46 = vadd.f32 %v385_v23, %v2889_v45 }
 0x122   :  { %v274_v50 = vpop.f32.mrf.mxu0  ;;  %v387_v56 = vpop.f32.mrf.mxu1 }
 0x123   :  { %3497 = vst [vmem:[#allocation38_spill] sm:$0xff] %v2956_v28  ;;  %3498 = vst [vmem:[#allocation39_spill] sm:$0xff] %v2959_v46  ;;  %v2962_v57 = vadd.f32 %v274_v50, %v2891_v52  ;;  %v2965_v60 = vadd.f32 %v387_v56, %v2893_v53 }
 0x124   :  { %v278_v61 = vpop.f32.mrf.mxu0  ;;  %v391_v1 = vpop.f32.mrf.mxu1 }
 0x125   :  { %3499 = vst [vmem:[#allocation40_spill] sm:$0xff] %v2962_v57  ;;  %3500 = vst [vmem:[#allocation41_spill] sm:$0xff] %v2965_v60  ;;  %v2968_v2 = vadd.f32 %v278_v61, %v2887_v40  ;;  %v2971_v0 = vadd.f32 %v391_v1, %v2889_v45 }
 0x126   :  { %v280_v12 = vpop.f32.mrf.mxu0  ;;  %v393_v28 = vpop.f32.mrf.mxu1 }
 0x127   :  { %3501 = vst [vmem:[#allocation42_spill] sm:$0xff] %v2968_v2  ;;  %3502 = vst [vmem:[#allocation43_spill] sm:$0xff] %v2971_v0  ;;  %v2974_v23 = vadd.f32 %v280_v12, %v2891_v52  ;;  %v2977_v46 = vadd.f32 %v393_v28, %v2893_v53 }
 0x128   :  { %v282_v50 = vpop.f32.mrf.mxu0  ;;  %v395_v57 = vpop.f32.mrf.mxu1 }
 0x129   :  { %3503 = vst [vmem:[#allocation44_spill] sm:$0xff] %v2974_v23  ;;  %3504 = vst [vmem:[#allocation45_spill] sm:$0xff] %v2977_v46  ;;  %v2980_v56 = vadd.f32 %v282_v50, %v2887_v40  ;;  %v2983_v60 = vadd.f32 %v395_v57, %v2889_v45 }
 0x12a   :  { %v284_v61 = vpop.f32.mrf.mxu0  ;;  %v397_v2 = vpop.f32.mrf.mxu1 }
 0x12b   :  { %3505 = vst [vmem:[#allocation46_spill] sm:$0xff] %v2980_v56  ;;  %3506 = vst [vmem:[#allocation47_spill] sm:$0xff] %v2983_v60  ;;  %v2986_v1 = vadd.f32 %v284_v61, %v2891_v52  ;;  %v2989_v0 = vadd.f32 %v397_v2, %v2893_v53 }
 0x12c   :  { %v288_v12 = vpop.f32.mrf.mxu0  ;;  %v401_v23 = vpop.f32.mrf.mxu1 }
 0x12d   :  { %3507 = vst [vmem:[#allocation48_spill] sm:$0xff] %v2986_v1  ;;  %3508 = vst [vmem:[#allocation49_spill] sm:$0xff] %v2989_v0  ;;  %v2992_v28 = vadd.f32 %v288_v12, %v2887_v40  ;;  %v2995_v46 = vadd.f32 %v401_v23, %v2889_v45 }
 0x12e   :  { %v290_v50 = vpop.f32.mrf.mxu0  ;;  %v403_v56 = vpop.f32.mrf.mxu1 }
 0x12f   :  { %3509 = vst [vmem:[#allocation50_spill] sm:$0xff] %v2992_v28  ;;  %3510 = vst [vmem:[#allocation51_spill] sm:$0xff] %v2995_v46  ;;  %v2998_v57 = vadd.f32 %v290_v50, %v2891_v52  ;;  %v3001_v60 = vadd.f32 %v403_v56, %v2893_v53 }
 0x130   :  { %v292_v61 = vpop.f32.mrf.mxu0  ;;  %v405_v1 = vpop.f32.mrf.mxu1 }
 0x131   :  { %3511 = vst [vmem:[#allocation52_spill] sm:$0xff] %v2998_v57  ;;  %3512 = vst [vmem:[#allocation53_spill] sm:$0xff] %v3001_v60  ;;  %v3004_v2 = vadd.f32 %v292_v61, %v2887_v40  ;;  %v3007_v0 = vadd.f32 %v405_v1, %v2889_v45 }
 0x132   :  { %v294_v12 = vpop.f32.mrf.mxu0  ;;  %v407_v28 = vpop.f32.mrf.mxu1 }
 0x133   :  { %3513 = vst [vmem:[#allocation54_spill] sm:$0xff] %v3004_v2  ;;  %3514 = vst [vmem:[#allocation55_spill] sm:$0xff] %v3007_v0  ;;  %v3010_v23 = vadd.f32 %v294_v12, %v2891_v52  ;;  %v3013_v46 = vadd.f32 %v407_v28, %v2893_v53 }
 0x134   :  { %v298_v50 = vpop.f32.mrf.mxu0  ;;  %v411_v57 = vpop.f32.mrf.mxu1 }
 0x135   :  { %3515 = vst [vmem:[#allocation56_spill] sm:$0xff] %v3010_v23  ;;  %3516 = vst [vmem:[#allocation57_spill] sm:$0xff] %v3013_v46  ;;  %v3016_v56 = vadd.f32 %v298_v50, %v2887_v40  ;;  %v3019_v60 = vadd.f32 %v411_v57, %v2889_v45 }
 0x136   :  { %v300_v61 = vpop.f32.mrf.mxu0  ;;  %v413_v2 = vpop.f32.mrf.mxu1 }
 0x137   :  { %3517 = vst [vmem:[#allocation58_spill] sm:$0xff] %v3016_v56  ;;  %3518 = vst [vmem:[#allocation59_spill] sm:$0xff] %v3019_v60  ;;  %v3022_v1 = vadd.f32 %v300_v61, %v2891_v52  ;;  %v3025_v0 = vadd.f32 %v413_v2, %v2893_v53 }
 0x138   :  { %v302_v12 = vpop.f32.mrf.mxu0  ;;  %v415_v23 = vpop.f32.mrf.mxu1 }
 0x139   :  { %3519 = vst [vmem:[#allocation60_spill] sm:$0xff] %v3022_v1  ;;  %3520 = vst [vmem:[#allocation61_spill] sm:$0xff] %v3025_v0  ;;  %v3028_v28 = vadd.f32 %v302_v12, %v2887_v40  ;;  %v3031_v46 = vadd.f32 %v415_v23, %v2889_v45 }
 0x13a   :  { %v304_v50 = vpop.f32.mrf.mxu0  ;;  %v417_v56 = vpop.f32.mrf.mxu1 }
 0x13b   :  { %3521 = vst [vmem:[#allocation62_spill] sm:$0xff] %v3028_v28  ;;  %3522 = vst [vmem:[#allocation63_spill] sm:$0xff] %v3031_v46  ;;  %v3034_v57 = vadd.f32 %v304_v50, %v2891_v52  ;;  %v3037_v60 = vadd.f32 %v417_v56, %v2893_v53 }
 0x13c   :  { %v308_v61 = vpop.f32.mrf.mxu0  ;;  %v421_v1 = vpop.f32.mrf.mxu1 }
 0x13d   :  { %3523 = vst [vmem:[#allocation64_spill] sm:$0xff] %v3034_v57  ;;  %3524 = vst [vmem:[#allocation65_spill] sm:$0xff] %v3037_v60  ;;  %v3040_v2 = vadd.f32 %v308_v61, %v2887_v40  ;;  %v3043_v0 = vadd.f32 %v421_v1, %v2889_v45  ;;  %v239_v1 = vadd.f32 %v2868_v3, %v2887_v40 }
 0x13e   :  { %v310_v12 = vpop.f32.mrf.mxu0  ;;  %v423_v28 = vpop.f32.mrf.mxu1  ;;  %v245_v3 = vadd.f32 %v2883_v34, %v2891_v52  ;;  %v356_v34 = vadd.f32 %v2881_v22, %v2889_v45 }
 0x13f   :  { %3525 = vst [vmem:[#allocation66_spill] sm:$0xff] %v3040_v2  ;;  %3526 = vst [vmem:[#allocation67_spill] sm:$0xff] %v3043_v0  ;;  %v3046_v23 = vadd.f32 %v310_v12, %v2891_v52  ;;  %v3049_v46 = vadd.f32 %v423_v28, %v2893_v53 }
 0x140   :  { %v312_v50 = vpop.f32.mrf.mxu0  ;;  %v425_v57 = vpop.f32.mrf.mxu1 }
 0x141   :  { %3527 = vst [vmem:[#allocation68_spill] sm:$0xff] %v3046_v23  ;;  %3528 = vst [vmem:[#allocation69_spill] sm:$0xff] %v3049_v46  ;;  %v3052_v56 = vadd.f32 %v312_v50, %v2887_v40  ;;  %v3055_v60 = vadd.f32 %v425_v57, %v2889_v45  ;;  %v241_v46 = vadd.f32 %v2872_v5, %v2891_v52 }
 0x142   :  { %v314_v61 = vpop.f32.mrf.mxu0  ;;  %v427_v2 = vpop.f32.mrf.mxu1  ;;  %v243_v57 = vadd.f32 %v2879_v17, %v2887_v40  ;;  %v352_v17 = vadd.f32 %v2870_v4, %v2889_v45 }
 0x143   :  { %3529 = vst [vmem:[#allocation70_spill] sm:$0xff] %v3052_v56  ;;  %3530 = vst [vmem:[#allocation71_spill] sm:$0xff] %v3055_v60  ;;  %v3060_v0 = vadd.f32 %v314_v61, %v2891_v52  ;;  %v3063_v12 = vadd.f32 %v427_v2, %v2893_v53  ;;  %v354_v52 = vadd.f32 %v2874_v6, %v2893_v53 }
 0x144   :  { %v725_v28 = vpop.f32.mrf.mxu0  ;;  %v768_v61 = vpop.f32.mrf.mxu1 }
 0x145   :  { %3531 = vst [vmem:[#allocation72_spill] sm:$0xff] %v3060_v0  ;;  %3532 = vst [vmem:[#allocation73_spill] sm:$0xff] %v3063_v12  ;;  %v785_v50 = vadd.f32 %v725_v28, %v239_v1  ;;  %v787_v40 = vadd.f32 %v768_v61, %v352_v17 }
 0x146   :  { %v727_v56 = vpop.f32.mrf.mxu0  ;;  %v770_v5 = vpop.f32.mrf.mxu1 }
 0x147   :  { %v2041_v60 = vmul.f32 -1.442695, %v785_v50  ;;  %v786_v23 = vadd.f32 %v727_v56, %v241_v46 }
 0x148   :  { %v729_v10 = vpop.f32.mrf.mxu0  ;;  %v772_v46 = vpop.f32.mrf.mxu1 }
 0x149   :  { %2156 = vpow2.f32 %v2041_v60  ;;  %v2042_v0 = vmul.f32 -1.442695, %v786_v23  ;;  %v789_v2 = vadd.f32 %v729_v10, %v243_v57  ;;  %v2043_v10 = vmul.f32 -1.442695, %v787_v40 }
 0x14a   :  { %v731_v12 = vpop.f32.mrf.mxu0  ;;  %v791_v60 = vadd.f32 %v772_v46, %v356_v34  ;;  %v788_v23 = vadd.f32 %v770_v5, %v354_v52  ;;  %v106_v34 = vld [vmem:[#allocation13 + $0x8] sm:$0xff] }
 0x14b   :  { %2158 = vpow2.f32 %v2042_v0  ;;  %v2044_v59 = vmul.f32 -1.442695, %v789_v2  ;;  %v790_v63 = vadd.f32 %v731_v12, %v245_v3  ;;  %v774_v12 = vpop.f32.mrf.mxu1  ;;  %v105_v2 = vld [vmem:[#allocation13] sm:$0xff] }
 0x14c   :  { %v2046_v4 = vmul.f32 -1.442695, %v791_v60 }
 0x14d   :  { %2160 = vpow2.f32 %v2044_v59  ;;  %v2045_v1 = vmul.f32 -1.442695, %v790_v63  ;;  %v358_v63 = vadd.f32 %v2885_v35, %v2893_v53 }
 0x14f   :  { %2162 = vpow2.f32 %v2045_v1  ;;  %v792_v22 = vadd.f32 %v774_v12, %v358_v63 }
 0x150   :  { %2164 = vpow2.f32 %v2043_v10 }
 0x156   :  { %v2157_v0 = vpop.eup %2156 }
 0x157   :  { %v811_v56 = vadd.f32 1.0, %v2157_v0 }
 0x158   :  { %v2159_v59 = vpop.eup %2158 }
 0x159   :  { %2166 = vrcp.f32 %v811_v56  ;;  %v812_v28 = vadd.f32 1.0, %v2159_v59 }
 0x15a   :  { %v2161_v50 = vpop.eup %2160  ;;  %2168 = vtanh.f32 %v788_v23 }
 0x15b   :  { %2170 = vrcp.f32 %v812_v28  ;;  %v814_v45 = vadd.f32 1.0, %v2161_v50 }
 0x15c   :  { %v2163_v6 = vpop.eup %2162  ;;  %2172 = vpow2.f32 %v2046_v4 }
 0x15d   :  { %2174 = vrcp.f32 %v814_v45  ;;  %v815_v57 = vadd.f32 1.0, %v2163_v6  ;;  %v2165_v3 = vpop.eup %2164  ;;  %v3533_v6 = vmov 0  }
 0x15e   :  { %2176 = vtanh.f32 %v792_v22  ;;  %v813_v53 = vadd.f32 1.0, %v2165_v3 }
 0x15f   :  { %2178 = vrcp.f32 %v815_v57 }
 0x160   :  { %2180 = vrcp.f32 %v813_v53 }
 0x166   :  { %v2167_v61 = vpop.eup %2166 }
 0x167   :  { %v2169_v5 = vpop.eup %2168  ;;  %v833_v40 = vmul.f32 %v2167_v61, %v105_v2 }
 0x168   :  { %v2171_v35 = vpop.eup %2170 }
 0x169   :  { %v2173_v1 = vpop.eup %2172  ;;  %v831_v17 = vmul.f32 %v2171_v35, %v2169_v5 }
 0x16a   :  { %v2175_v46 = vpop.eup %2174  ;;  %v816_v0 = vadd.f32 1.0, %v2173_v1 }
 0x16b   :  { %v2177_v52 = vpop.eup %2176  ;;  %v835_v10 = vadd.f32 %v833_v40, %v831_v17  ;;  %v834_v56 = vmul.f32 %v2175_v46, %v106_v34 }
 0x16c   :  { %v2179_v60 = vpop.eup %2178 }
 0x16d   :  { %2182 = vtanh.f32 %v835_v10  ;;  %v832_v23 = vmul.f32 %v2179_v60, %v2177_v52  ;;  %v2181_v59 = vpop.eup %2180 }
 0x16e   :  { %2184 = vrcp.f32 %v816_v0 }
 0x16f   :  { %v836_v12 = vadd.f32 %v834_v56, %v832_v23  ;;  %v3535_v23 = vld [vmem:[#allocation23_spill] sm:$0xff] }
 0x171   :  { %2186 = vtanh.f32 %v836_v12 }
 0x17a   :  { %v3079_v63 = vpop.eup %2182 }
 0x17b   :  { %v839_v4 = vmul.f32 %v3079_v63, %v2181_v59  ;;  %v2185_v28 = vpop.eup %2184 }
 0x17d   :  { %841 = vst [vmem:[#allocation14] sm:$0xff] %v839_v4 }
 0x17e   :  { %v3082_v50 = vpop.eup %2186 }
 0x17f   :  { %v840_v22 = vmul.f32 %v3082_v50, %v2185_v28 }
 0x181   :  { %842 = vst [vmem:[#allocation14 + $0x8] sm:$0xff] %v840_v22  ;;  %v843_v45 = vpack.c.bf16 %v840_v22, %v839_v4  ;;  %v3536_v22 = vld [vmem:[#allocation25_spill] sm:$0xff] }
 0x183   :  { %877 = vmatmul.mubr.bf16.vlgmr.msra.gmra.mxu0 %v843_v45  ;;  %920 = vmatmul.mubr.bf16.vlgmr.msra.gmra.mxu1 %v843_v45 }
 0x184   :  { %1000 = vmatpush1.bf16.msra.mxu0 %v2706_v9  ;;  %1043 = vmatpush1.bf16.msra.mxu1 %v2723_v16 }
 0x185   :  { %1001 = vmatprep.subr.bf16.mxu0 %v2709_v11  ;;  %1044 = vmatprep.subr.bf16.mxu1 %v2728_v18 }
 0x186   :  { %1031 = vmatprep.mubr.bf16.mxu0 %v3533_v6  ;;  %1074 = vmatprep.mubr.bf16.mxu1 %v3533_v6 }
 0x188   :  { %1002 = vmatpush1.bf16.msra.mxu0 %v2715_v13  ;;  %1045 = vmatpush1.bf16.msra.mxu1 %v2733_v20 }
 0x189   :  { %1003 = vmatprep.subr.bf16.mxu0 %v2717_v14  ;;  %1046 = vmatprep.subr.bf16.mxu1 %v2744_v25 }
 0x18c   :  { %1004 = vmatpush1.bf16.msra.mxu0 %v2731_v19  ;;  %1047 = vmatpush1.bf16.msra.mxu1 %v2748_v26 }
 0x18d   :  { %1005 = vmatprep.subr.bf16.mxu0 %v2735_v21  ;;  %1048 = vmatprep.subr.bf16.mxu1 %v2754_v29 }
 0x190   :  { %1006 = vmatpush1.bf16.msra.mxu0 %v2742_v24  ;;  %1049 = vmatpush1.bf16.msra.mxu1 %v2760_v31 }
 0x191   :  { %1007 = vmatprep.subr.bf16.mxu0 %v2751_v27  ;;  %1050 = vmatprep.subr.bf16.mxu1 %v2766_v33 }
 0x194   :  { %1008 = vmatpush1.bf16.msra.mxu0 %v2756_v30  ;;  %1051 = vmatpush1.bf16.msra.mxu1 %v2778_v38 }
 0x195   :  { %1009 = vmatprep.subr.bf16.mxu0 %v2763_v32  ;;  %1052 = vmatprep.subr.bf16.mxu1 %v2782_v39 }
 0x198   :  { %1010 = vmatpush1.bf16.msra.mxu0 %v2772_v36  ;;  %1053 = vmatpush1.bf16.msra.mxu1 %v2788_v42 }
 0x199   :  { %1011 = vmatprep.subr.bf16.mxu0 %v2774_v37  ;;  %1054 = vmatprep.subr.bf16.mxu1 %v2794_v44 }
 0x19c   :  { %1012 = vmatpush1.bf16.msra.mxu0 %v2785_v41  ;;  %1055 = vmatpush1.bf16.msra.mxu1 %v2804_v48 }
 0x19d   :  { %1013 = vmatprep.subr.bf16.mxu0 %v2792_v43  ;;  %1056 = vmatprep.subr.bf16.mxu1 %v2808_v49 }
 0x1a0   :  { %1014 = vmatpush1.bf16.msra.mxu0 %v2802_v47  ;;  %1057 = vmatpush1.bf16.msra.mxu1 %v2812_v51 }
 0x1a1   :  { %1154 = vmatprep.subr.bf16.mxu0 %v2704_v8  ;;  %1197 = vmatprep.subr.bf16.mxu1 %v2721_v15 }
 0x243   :  { %v878_v57 = vpop.f32.mrf.mxu0  ;;  %v921_v53 = vpop.f32.mrf.mxu1 }
 0x244   :  { %v939_v3 = vadd.f32 %v878_v57, %v2896_v54  ;;  %v941_v54 = vadd.f32 %v921_v53, %v2899_v55 }
 0x245   :  { %v880_v61 = vpop.f32.mrf.mxu0  ;;  %v923_v34 = vpop.f32.mrf.mxu1 }
 0x246   :  { %v2047_v2 = vmul.f32 -1.442695, %v939_v3  ;;  %v940_v5 = vadd.f32 %v880_v61, %v2902_v58  ;;  %v2049_v10 = vmul.f32 -1.442695, %v941_v54  ;;  %v3534_v58 = vld [vmem:[#allocation24_spill] sm:$0xff]  ;;  %v942_v56 = vadd.f32 %v923_v34, %v3535_v23 }
 0x247   :  { %v882_v35 = vpop.f32.mrf.mxu0  ;;  %v925_v52 = vpop.f32.mrf.mxu1 }
 0x248   :  { %2188 = vpow2.f32 %v2047_v2  ;;  %v2048_v1 = vmul.f32 -1.442695, %v940_v5  ;;  %v943_v17 = vadd.f32 %v882_v35, %v2908_v62  ;;  %v945_v60 = vadd.f32 %v925_v52, %v3534_v58 }
 0x249   :  { %v884_v40 = vpop.f32.mrf.mxu0  ;;  %v927_v62 = vpop.f32.mrf.mxu1 }
 0x24a   :  { %2190 = vpow2.f32 %v2048_v1  ;;  %v2050_v46 = vmul.f32 -1.442695, %v943_v17  ;;  %v944_v8 = vadd.f32 %v884_v40, %v2914_v7  ;;  %v2052_v4 = vmul.f32 -1.442695, %v945_v60 }
 0x24b   :  { %v946_v45 = vadd.f32 %v927_v62, %v3536_v22  ;;  %v3544_v22 = vld [vmem:[#allocation33_spill] sm:$0xff] }
 0x24c   :  { %2192 = vpow2.f32 %v2050_v46  ;;  %v2051_v15 = vmul.f32 -1.442695, %v944_v8 }
 0x24e   :  { %2194 = vpow2.f32 %v2051_v15 }
 0x24f   :  { %2196 = vpow2.f32 %v2049_v10 }
 0x255   :  { %v2189_v0 = vpop.eup %2188 }
 0x256   :  { %v965_v12 = vadd.f32 1.0, %v2189_v0 }
 0x257   :  { %v2191_v59 = vpop.eup %2190 }
 0x258   :  { %2198 = vrcp.f32 %v965_v12  ;;  %v966_v7 = vadd.f32 1.0, %v2191_v59 }
 0x259   :  { %v2193_v28 = vpop.eup %2192  ;;  %2200 = vtanh.f32 %v942_v56 }
 0x25a   :  { %2202 = vrcp.f32 %v966_v7  ;;  %v968_v55 = vadd.f32 1.0, %v2193_v28 }
 0x25b   :  { %v2195_v57 = vpop.eup %2194  ;;  %2204 = vpow2.f32 %v2052_v4 }
 0x25c   :  { %2206 = vrcp.f32 %v968_v55  ;;  %v969_v3 = vadd.f32 1.0, %v2195_v57  ;;  %v2197_v61 = vpop.eup %2196 }
 0x25d   :  { %2208 = vtanh.f32 %v946_v45  ;;  %v967_v53 = vadd.f32 1.0, %v2197_v61 }
 0x25e   :  { %2210 = vrcp.f32 %v969_v3 }
 0x25f   :  { %2212 = vrcp.f32 %v967_v53 }
 0x265   :  { %v2199_v2 = vpop.eup %2198 }
 0x266   :  { %v2201_v5 = vpop.eup %2200  ;;  %v987_v40 = vmul.f32 %v2199_v2, %v3079_v63 }
 0x267   :  { %v2203_v35 = vpop.eup %2202 }
 0x268   :  { %v2205_v1 = vpop.eup %2204  ;;  %v985_v17 = vmul.f32 %v2203_v35, %v2201_v5 }
 0x269   :  { %v2207_v46 = vpop.eup %2206  ;;  %v970_v54 = vadd.f32 1.0, %v2205_v1 }
 0x26a   :  { %v2209_v8 = vpop.eup %2208  ;;  %v989_v34 = vadd.f32 %v987_v40, %v985_v17  ;;  %v988_v10 = vmul.f32 %v2207_v46, %v3082_v50 }
 0x26b   :  { %v2211_v15 = vpop.eup %2210 }
 0x26c   :  { %2214 = vtanh.f32 %v989_v34  ;;  %v986_v52 = vmul.f32 %v2211_v15, %v2209_v8  ;;  %v2213_v60 = vpop.eup %2212 }
 0x26d   :  { %2216 = vrcp.f32 %v970_v54 }
 0x26e   :  { %v990_v58 = vadd.f32 %v988_v10, %v986_v52 }
 0x270   :  { %2218 = vtanh.f32 %v990_v58 }
 0x279   :  { %v3129_v0 = vpop.eup %2214 }
 0x27a   :  { %v993_v23 = vmul.f32 %v3129_v0, %v2213_v60  ;;  %v2217_v56 = vpop.eup %2216 }
 0x27c   :  { %996 = vst [vmem:[#allocation14 + $0x10] sm:$0xff] %v993_v23 }
 0x27d   :  { %v3132_v63 = vpop.eup %2218 }
 0x27e   :  { %v994_v12 = vmul.f32 %v3132_v63, %v2217_v56 }
 0x280   :  { %997 = vst [vmem:[#allocation14 + $0x18] sm:$0xff] %v994_v12  ;;  %v998_v62 = vpack.c.bf16 %v994_v12, %v993_v23 }
 0x282   :  { %1032 = vmatmul.mubr.bf16.vlgmr.msra.gmra.mxu0 %v998_v62  ;;  %1075 = vmatmul.mubr.bf16.vlgmr.msra.gmra.mxu1 %v998_v62 }
 0x283   :  { %1155 = vmatpush1.bf16.msra.mxu0 %v2706_v9  ;;  %1198 = vmatpush1.bf16.msra.mxu1 %v2723_v16  ;;  %v3167_v9 = vld [vmem:[#allocation10 + $0xe4] ss:$16 sps:$4 sm:$0xff]  }
 0x284   :  { %1156 = vmatprep.subr.bf16.mxu0 %v2709_v11  ;;  %1199 = vmatprep.subr.bf16.mxu1 %v2728_v18  ;;  %v3170_v11 = vld [vmem:[#allocation10 + $0xec] ss:$16 sps:$4 sm:$0xff]  }
 0x285   :  { %1186 = vmatprep.mubr.bf16.mxu0 %v3533_v6  ;;  %1229 = vmatprep.mubr.bf16.mxu1 %v3533_v6 }
 0x287   :  { %1157 = vmatpush1.bf16.msra.mxu0 %v2715_v13  ;;  %1200 = vmatpush1.bf16.msra.mxu1 %v2733_v20  ;;  %v3538_v20 = vld [vmem:[#allocation28_spill] sm:$0xff] }
 0x288   :  { %1158 = vmatprep.subr.bf16.mxu0 %v2717_v14  ;;  %1201 = vmatprep.subr.bf16.mxu1 %v2744_v25  ;;  %v3537_v14 = vld [vmem:[#allocation26_spill] sm:$0xff] }
 0x28b   :  { %1159 = vmatpush1.bf16.msra.mxu0 %v2731_v19  ;;  %1202 = vmatpush1.bf16.msra.mxu1 %v2748_v26 }
 0x28c   :  { %1160 = vmatprep.subr.bf16.mxu0 %v2735_v21  ;;  %1203 = vmatprep.subr.bf16.mxu1 %v2754_v29 }
 0x28f   :  { %1161 = vmatpush1.bf16.msra.mxu0 %v2742_v24  ;;  %1204 = vmatpush1.bf16.msra.mxu1 %v2760_v31 }
 0x290   :  { %1162 = vmatprep.subr.bf16.mxu0 %v2751_v27  ;;  %1205 = vmatprep.subr.bf16.mxu1 %v2766_v33  ;;  %v3539_v27 = vld [vmem:[#allocation30_spill] sm:$0xff] }
 0x293   :  { %1163 = vmatpush1.bf16.msra.mxu0 %v2756_v30  ;;  %1206 = vmatpush1.bf16.msra.mxu1 %v2778_v38  ;;  %v3541_v38 = vld [vmem:[#allocation27_spill] sm:$0xff] }
 0x294   :  { %1164 = vmatprep.subr.bf16.mxu0 %v2763_v32  ;;  %1207 = vmatprep.subr.bf16.mxu1 %v2782_v39  ;;  %v3540_v32 = vld [vmem:[#allocation32_spill] sm:$0xff] }
 0x297   :  { %1165 = vmatpush1.bf16.msra.mxu0 %v2772_v36  ;;  %1208 = vmatpush1.bf16.msra.mxu1 %v2788_v42 }
 0x298   :  { %1166 = vmatprep.subr.bf16.mxu0 %v2774_v37  ;;  %1209 = vmatprep.subr.bf16.mxu1 %v2794_v44 }
 0x29b   :  { %1167 = vmatpush1.bf16.msra.mxu0 %v2785_v41  ;;  %1210 = vmatpush1.bf16.msra.mxu1 %v2804_v48  ;;  %v3543_v48 = vld [vmem:[#allocation29_spill] sm:$0xff] }
 0x29c   :  { %1168 = vmatprep.subr.bf16.mxu0 %v2792_v43  ;;  %1211 = vmatprep.subr.bf16.mxu1 %v2808_v49  ;;  %v3542_v43 = vld [vmem:[#allocation31_spill] sm:$0xff] }
 0x29f   :  { %1169 = vmatpush1.bf16.msra.mxu0 %v2802_v47  ;;  %1212 = vmatpush1.bf16.msra.mxu1 %v2812_v51 }
 0x2a0   :  { %1309 = vmatprep.subr.bf16.mxu0 %v3167_v9  ;;  %1352 = vmatprep.subr.bf16.mxu1 %v3170_v11 }
 0x342   :  { %v1033_v13 = vpop.f32.mrf.mxu0  ;;  %v1076_v25 = vpop.f32.mrf.mxu1 }
 0x343   :  { %v1094_v16 = vadd.f32 %v1033_v13, %v3537_v14  ;;  %v1096_v39 = vadd.f32 %v1076_v25, %v3541_v38  ;;  %v3189_v14 = vld [vmem:[#allocation10 + $0xe0] ss:$16 sps:$4 sm:$0xff]   ;;  %v3245_v38 = vld [vmem:[#allocation10 + $0x44] ss:$16 sps:$4 sm:$0xff]  }
 0x344   :  { %v1035_v18 = vpop.f32.mrf.mxu0  ;;  %v1078_v36 = vpop.f32.mrf.mxu1  ;;  %v3215_v25 = vld [vmem:[#allocation10 + $0xa0] ss:$16 sps:$4 sm:$0xff]  }
 0x345   :  { %v2053_v19 = vmul.f32 -1.442695, %v1094_v16  ;;  %v1095_v21 = vadd.f32 %v1035_v18, %v3538_v20  ;;  %v2055_v42 = vmul.f32 -1.442695, %v1096_v39  ;;  %v1097_v49 = vadd.f32 %v1078_v36, %v3543_v48  ;;  %v3195_v16 = vld [vmem:[#allocation10 + $0xc4] ss:$16 sps:$4 sm:$0xff]  }
 0x346   :  { %v1037_v24 = vpop.f32.mrf.mxu0  ;;  %v1080_v41 = vpop.f32.mrf.mxu1  ;;  %v3198_v18 = vld [vmem:[#allocation10 + $0xcc] ss:$16 sps:$4 sm:$0xff]   ;;  %v3206_v20 = vld [vmem:[#allocation10 + $0xc8] ss:$16 sps:$4 sm:$0xff]   ;;  %v3239_v36 = vld [vmem:[#allocation10 + $0x60] ss:$16 sps:$4 sm:$0xff]  }
 0x347   :  { %2220 = vpow2.f32 %v2053_v19  ;;  %v2054_v26 = vmul.f32 -1.442695, %v1095_v21  ;;  %v1098_v29 = vadd.f32 %v1037_v24, %v3539_v27  ;;  %v1100_v44 = vadd.f32 %v1080_v41, %v3542_v43  ;;  %v3203_v19 = vld [vmem:[#allocation10 + $0xc0] ss:$16 sps:$4 sm:$0xff]   ;;  %v3209_v21 = vld [vmem:[#allocation10 + $0xa4] ss:$16 sps:$4 sm:$0xff]  }
 0x348   :  { %v1039_v30 = vpop.f32.mrf.mxu0  ;;  %v1082_v50 = vpop.f32.mrf.mxu1  ;;  %v3212_v24 = vld [vmem:[#allocation10 + $0xac] ss:$16 sps:$4 sm:$0xff]   ;;  %v3221_v27 = vld [vmem:[#allocation10 + $0x84] ss:$16 sps:$4 sm:$0xff]   ;;  %v3251_v41 = vld [vmem:[#allocation10 + $0x40] ss:$16 sps:$4 sm:$0xff]  }
 0x349   :  { %2222 = vpow2.f32 %v2054_v26  ;;  %v2056_v31 = vmul.f32 -1.442695, %v1098_v29  ;;  %v1099_v33 = vadd.f32 %v1039_v30, %v3540_v32  ;;  %v2058_v4 = vmul.f32 -1.442695, %v1100_v44  ;;  %v3218_v26 = vld [vmem:[#allocation10 + $0xa8] ss:$16 sps:$4 sm:$0xff]  }
 0x34a   :  { %v1101_v45 = vadd.f32 %v1082_v50, %v3544_v22  ;;  %v3224_v29 = vld [vmem:[#allocation10 + $0x8c] ss:$16 sps:$4 sm:$0xff]   ;;  %v3227_v30 = vld [vmem:[#allocation10 + $0x80] ss:$16 sps:$4 sm:$0xff]   ;;  %v3233_v32 = vld [vmem:[#allocation10 + $0x64] ss:$16 sps:$4 sm:$0xff]  }
 0x34b   :  { %2224 = vpow2.f32 %v2056_v31  ;;  %v2057_v37 = vmul.f32 -1.442695, %v1099_v33  ;;  %v3230_v31 = vld [vmem:[#allocation10 + $0x88] ss:$16 sps:$4 sm:$0xff]   ;;  %v3236_v33 = vld [vmem:[#allocation10 + $0x6c] ss:$16 sps:$4 sm:$0xff]  }
 0x34c   :  { %v3248_v39 = vld [vmem:[#allocation10 + $0x4c] ss:$16 sps:$4 sm:$0xff]   ;;  %v3257_v43 = vld [vmem:[#allocation10 + $0x24] ss:$16 sps:$4 sm:$0xff]   ;;  %v3266_v48 = vld [vmem:[#allocation10 + $0x28] ss:$16 sps:$4 sm:$0xff]  }
 0x34d   :  { %2226 = vpow2.f32 %v2057_v37  ;;  %v3242_v37 = vld [vmem:[#allocation10 + $0x68] ss:$16 sps:$4 sm:$0xff]   ;;  %v3260_v44 = vld [vmem:[#allocation10 + $0x2c] ss:$16 sps:$4 sm:$0xff]   ;;  %v3275_v50 = vld [vmem:[#allocation10] ss:$16 sps:$4 sm:$0xff]  }
 0x34e   :  { %2228 = vpow2.f32 %v2055_v42  ;;  %v3254_v42 = vld [vmem:[#allocation10 + $0x48] ss:$16 sps:$4 sm:$0xff]  }
 0x354   :  { %v2221_v47 = vpop.eup %2220 }
 0x355   :  { %v1120_v51 = vadd.f32 1.0, %v2221_v47  ;;  %v3263_v47 = vld [vmem:[#allocation10 + $0x20] ss:$16 sps:$4 sm:$0xff]  }
 0x356   :  { %v2223_v59 = vpop.eup %2222 }
 0x357   :  { %2230 = vrcp.f32 %v1120_v51  ;;  %v1121_v7 = vadd.f32 1.0, %v2223_v59  ;;  %v3272_v51 = vld [vmem:[#allocation10 + $0xc] ss:$16 sps:$4 sm:$0xff]   ;;  %v3278_v59 = vld [vmem:[#allocation10 + $0x8] ss:$16 sps:$4 sm:$0xff]  }
 0x358   :  { %v2225_v28 = vpop.eup %2224  ;;  %2232 = vtanh.f32 %v1097_v49  ;;  %v3269_v49 = vld [vmem:[#allocation10 + $0x4] ss:$16 sps:$4 sm:$0xff]  }
 0x359   :  { %2234 = vrcp.f32 %v1121_v7  ;;  %v1123_v55 = vadd.f32 1.0, %v2225_v28  ;;  %v3545_v7 = vld [vmem:[#allocation34_spill] sm:$0xff] }
 0x35a   :  { %v2227_v57 = vpop.eup %2226  ;;  %2236 = vpow2.f32 %v2058_v4 }
 0x35b   :  { %2238 = vrcp.f32 %v1123_v55  ;;  %v1124_v3 = vadd.f32 1.0, %v2227_v57  ;;  %v2229_v61 = vpop.eup %2228  ;;  %v3546_v55 = vld [vmem:[#allocation36_spill] sm:$0xff] }
 0x35c   :  { %2240 = vtanh.f32 %v1101_v45  ;;  %v1122_v53 = vadd.f32 1.0, %v2229_v61 }
 0x35d   :  { %2242 = vrcp.f32 %v1124_v3 }
 0x35e   :  { %2244 = vrcp.f32 %v1122_v53 }
 0x364   :  { %v2231_v2 = vpop.eup %2230 }
 0x365   :  { %v2233_v5 = vpop.eup %2232  ;;  %v1142_v40 = vmul.f32 %v2231_v2, %v3129_v0 }
 0x366   :  { %v2235_v35 = vpop.eup %2234 }
 0x367   :  { %v2237_v1 = vpop.eup %2236  ;;  %v1140_v17 = vmul.f32 %v2235_v35, %v2233_v5  ;;  %v3547_v5 = vld [vmem:[#allocation38_spill] sm:$0xff] }
 0x368   :  { %v2239_v46 = vpop.eup %2238  ;;  %v1125_v54 = vadd.f32 1.0, %v2237_v1 }
 0x369   :  { %v2241_v8 = vpop.eup %2240  ;;  %v1144_v34 = vadd.f32 %v1142_v40, %v1140_v17  ;;  %v1143_v10 = vmul.f32 %v2239_v46, %v3132_v63  ;;  %v3192_v63 = vld [vmem:[#allocation10 + $0xe8] ss:$16 sps:$4 sm:$0xff]  }
 0x36a   :  { %v2243_v15 = vpop.eup %2242  ;;  %v3548_v17 = vld [vmem:[#allocation40_spill] sm:$0xff] }
 0x36b   :  { %2246 = vtanh.f32 %v1144_v34  ;;  %v1141_v52 = vmul.f32 %v2243_v15, %v2241_v8  ;;  %v2245_v60 = vpop.eup %2244  ;;  %v3549_v34 = vld [vmem:[#allocation35_spill] sm:$0xff] }
 0x36c   :  { %2248 = vrcp.f32 %v1125_v54 }
 0x36d   :  { %v1145_v58 = vadd.f32 %v1143_v10, %v1141_v52  ;;  %v3550_v10 = vld [vmem:[#allocation39_spill] sm:$0xff] }
 0x36f   :  { %2250 = vtanh.f32 %v1145_v58 }
 0x378   :  { %v3183_v23 = vpop.eup %2246 }
 0x379   :  { %v1148_v56 = vmul.f32 %v3183_v23, %v2245_v60  ;;  %v2249_v12 = vpop.eup %2248 }
 0x37b   :  { %1151 = vst [vmem:[#allocation14 + $0x20] sm:$0xff] %v1148_v56 }
 0x37c   :  { %v3186_v0 = vpop.eup %2250 }
 0x37d   :  { %v1149_v62 = vmul.f32 %v3186_v0, %v2249_v12 }
 0x37f   :  { %1152 = vst [vmem:[#allocation14 + $0x28] sm:$0xff] %v1149_v62  ;;  %v1153_v13 = vpack.c.bf16 %v1149_v62, %v1148_v56  ;;  %v3551_v56 = vld [vmem:[#allocation37_spill] sm:$0xff] }
 0x381   :  { %1187 = vmatmul.mubr.bf16.vlgmr.msra.gmra.mxu0 %v1153_v13  ;;  %1230 = vmatmul.mubr.bf16.vlgmr.msra.gmra.mxu1 %v1153_v13 }
 0x382   :  { %1310 = vmatpush1.bf16.msra.mxu0 %v3189_v14  ;;  %1353 = vmatpush1.bf16.msra.mxu1 %v3192_v63 }
 0x383   :  { %1311 = vmatprep.subr.bf16.mxu0 %v3195_v16  ;;  %1354 = vmatprep.subr.bf16.mxu1 %v3198_v18 }
 0x384   :  { %1341 = vmatprep.mubr.bf16.mxu0 %v3533_v6  ;;  %1384 = vmatprep.mubr.bf16.mxu1 %v3533_v6 }
 0x386   :  { %1312 = vmatpush1.bf16.msra.mxu0 %v3203_v19  ;;  %1355 = vmatpush1.bf16.msra.mxu1 %v3206_v20 }
 0x387   :  { %1313 = vmatprep.subr.bf16.mxu0 %v3209_v21  ;;  %1356 = vmatprep.subr.bf16.mxu1 %v3212_v24 }
 0x38a   :  { %1314 = vmatpush1.bf16.msra.mxu0 %v3215_v25  ;;  %1357 = vmatpush1.bf16.msra.mxu1 %v3218_v26 }
 0x38b   :  { %1315 = vmatprep.subr.bf16.mxu0 %v3221_v27  ;;  %1358 = vmatprep.subr.bf16.mxu1 %v3224_v29 }
 0x38e   :  { %1316 = vmatpush1.bf16.msra.mxu0 %v3227_v30  ;;  %1359 = vmatpush1.bf16.msra.mxu1 %v3230_v31 }
 0x38f   :  { %1317 = vmatprep.subr.bf16.mxu0 %v3233_v32  ;;  %1360 = vmatprep.subr.bf16.mxu1 %v3236_v33 }
 0x392   :  { %1318 = vmatpush1.bf16.msra.mxu0 %v3239_v36  ;;  %1361 = vmatpush1.bf16.msra.mxu1 %v3242_v37 }
 0x393   :  { %1319 = vmatprep.subr.bf16.mxu0 %v3245_v38  ;;  %1362 = vmatprep.subr.bf16.mxu1 %v3248_v39 }
 0x396   :  { %1320 = vmatpush1.bf16.msra.mxu0 %v3251_v41  ;;  %1363 = vmatpush1.bf16.msra.mxu1 %v3254_v42 }
 0x397   :  { %1321 = vmatprep.subr.bf16.mxu0 %v3257_v43  ;;  %1364 = vmatprep.subr.bf16.mxu1 %v3260_v44 }
 0x39a   :  { %1322 = vmatpush1.bf16.msra.mxu0 %v3263_v47  ;;  %1365 = vmatpush1.bf16.msra.mxu1 %v3266_v48 }
 0x39b   :  { %1323 = vmatprep.subr.bf16.mxu0 %v3269_v49  ;;  %1366 = vmatprep.subr.bf16.mxu1 %v3272_v51 }
 0x39e   :  { %1324 = vmatpush1.bf16.msra.mxu0 %v3275_v50  ;;  %1367 = vmatpush1.bf16.msra.mxu1 %v3278_v59 }
 0x39f   :  { %1464 = vmatprep.subr.bf16.mxu0 %v3167_v9  ;;  %1507 = vmatprep.subr.bf16.mxu1 %v3170_v11 }
 0x441   :  { %v1188_v4 = vpop.f32.mrf.mxu0  ;;  %v1231_v61 = vpop.f32.mrf.mxu1 }
 0x442   :  { %v1249_v28 = vadd.f32 %v1188_v4, %v3545_v7  ;;  %v1251_v15 = vadd.f32 %v1231_v61, %v3549_v34 }
 0x443   :  { %v1190_v22 = vpop.f32.mrf.mxu0  ;;  %v1233_v46 = vpop.f32.mrf.mxu1 }
 0x444   :  { %v2059_v45 = vmul.f32 -1.442695, %v1249_v28  ;;  %v1250_v57 = vadd.f32 %v1190_v22, %v3546_v55  ;;  %v2061_v52 = vmul.f32 -1.442695, %v1251_v15  ;;  %v1252_v12 = vadd.f32 %v1233_v46, %v3551_v56 }
 0x445   :  { %v1192_v3 = vpop.f32.mrf.mxu0  ;;  %v1235_v54 = vpop.f32.mrf.mxu1 }
 0x446   :  { %2252 = vpow2.f32 %v2059_v45  ;;  %v2060_v2 = vmul.f32 -1.442695, %v1250_v57  ;;  %v1253_v35 = vadd.f32 %v1192_v3, %v3547_v5  ;;  %v1255_v58 = vadd.f32 %v1235_v54, %v3550_v10  ;;  %v3552_v45 = vld [vmem:[#allocation41_spill] sm:$0xff] }
 0x447   :  { %v1194_v53 = vpop.f32.mrf.mxu0  ;;  %v1237_v13 = vpop.f32.mrf.mxu1 }
 0x448   :  { %2254 = vpow2.f32 %v2060_v2  ;;  %v2062_v1 = vmul.f32 -1.442695, %v1253_v35  ;;  %v1254_v40 = vadd.f32 %v1194_v53, %v3548_v17  ;;  %v2064_v7 = vmul.f32 -1.442695, %v1255_v58 }
 0x449   :  { %v1256_v55 = vadd.f32 %v1237_v13, %v3552_v45 }
 0x44a   :  { %2256 = vpow2.f32 %v2062_v1  ;;  %v2063_v8 = vmul.f32 -1.442695, %v1254_v40 }
 0x44c   :  { %2258 = vpow2.f32 %v2063_v8 }
 0x44d   :  { %2260 = vpow2.f32 %v2061_v52 }
 0x453   :  { %v2253_v60 = vpop.eup %2252 }
 0x454   :  { %v1275_v62 = vadd.f32 1.0, %v2253_v60 }
 0x455   :  { %v2255_v4 = vpop.eup %2254 }
 0x456   :  { %2262 = vrcp.f32 %v1275_v62  ;;  %v1276_v28 = vadd.f32 1.0, %v2255_v4 }
 0x457   :  { %v2257_v22 = vpop.eup %2256  ;;  %2264 = vtanh.f32 %v1252_v12 }
 0x458   :  { %2266 = vrcp.f32 %v1276_v28  ;;  %v1278_v57 = vadd.f32 1.0, %v2257_v22  ;;  %v3553_v28 = vld [vmem:[#allocation42_spill] sm:$0xff] }
 0x459   :  { %v2259_v3 = vpop.eup %2258  ;;  %2268 = vpow2.f32 %v2064_v7 }
 0x45a   :  { %2270 = vrcp.f32 %v1278_v57  ;;  %v1279_v61 = vadd.f32 1.0, %v2259_v3  ;;  %v2261_v2 = vpop.eup %2260  ;;  %v3554_v57 = vld [vmem:[#allocation44_spill] sm:$0xff] }
 0x45b   :  { %2272 = vtanh.f32 %v1256_v55  ;;  %v1277_v1 = vadd.f32 1.0, %v2261_v2 }
 0x45c   :  { %2274 = vrcp.f32 %v1279_v61 }
 0x45d   :  { %2276 = vrcp.f32 %v1277_v1 }
 0x463   :  { %v2263_v5 = vpop.eup %2262 }
 0x464   :  { %v2265_v35 = vpop.eup %2264  ;;  %v1297_v46 = vmul.f32 %v2263_v5, %v3183_v23 }
 0x465   :  { %v2267_v53 = vpop.eup %2266 }
 0x466   :  { %v2269_v17 = vpop.eup %2268  ;;  %v1295_v40 = vmul.f32 %v2267_v53, %v2265_v35  ;;  %v3555_v35 = vld [vmem:[#allocation46_spill] sm:$0xff] }
 0x467   :  { %v2271_v8 = vpop.eup %2270  ;;  %v1280_v52 = vadd.f32 1.0, %v2269_v17 }
 0x468   :  { %v2273_v34 = vpop.eup %2272  ;;  %v1299_v15 = vadd.f32 %v1297_v46, %v1295_v40  ;;  %v1298_v58 = vmul.f32 %v2271_v8, %v3186_v0  ;;  %v3556_v40 = vld [vmem:[#allocation48_spill] sm:$0xff] }
 0x469   :  { %v2275_v54 = vpop.eup %2274 }
 0x46a   :  { %2278 = vtanh.f32 %v1299_v15  ;;  %v1296_v10 = vmul.f32 %v2275_v54, %v2273_v34  ;;  %v2277_v56 = vpop.eup %2276  ;;  %v3557_v15 = vld [vmem:[#allocation43_spill] sm:$0xff] }
 0x46b   :  { %2280 = vrcp.f32 %v1280_v52 }
 0x46c   :  { %v1300_v60 = vadd.f32 %v1298_v58, %v1296_v10  ;;  %v3558_v58 = vld [vmem:[#allocation47_spill] sm:$0xff] }
 0x46e   :  { %2282 = vtanh.f32 %v1300_v60 }
 0x477   :  { %v3293_v12 = vpop.eup %2278 }
 0x478   :  { %v1303_v62 = vmul.f32 %v3293_v12, %v2277_v56  ;;  %v2281_v13 = vpop.eup %2280 }
 0x47a   :  { %1306 = vst [vmem:[#allocation14 + $0x30] sm:$0xff] %v1303_v62 }
 0x47b   :  { %v3296_v23 = vpop.eup %2282 }
 0x47c   :  { %v1304_v4 = vmul.f32 %v3296_v23, %v2281_v13 }
 0x47e   :  { %1307 = vst [vmem:[#allocation14 + $0x38] sm:$0xff] %v1304_v4  ;;  %v1308_v7 = vpack.c.bf16 %v1304_v4, %v1303_v62  ;;  %v3559_v62 = vld [vmem:[#allocation45_spill] sm:$0xff] }
 0x480   :  { %1342 = vmatmul.mubr.bf16.vlgmr.msra.gmra.mxu0 %v1308_v7  ;;  %1385 = vmatmul.mubr.bf16.vlgmr.msra.gmra.mxu1 %v1308_v7 }
 0x481   :  { %1465 = vmatpush1.bf16.msra.mxu0 %v3189_v14  ;;  %1508 = vmatpush1.bf16.msra.mxu1 %v3192_v63 }
 0x482   :  { %1466 = vmatprep.subr.bf16.mxu0 %v3195_v16  ;;  %1509 = vmatprep.subr.bf16.mxu1 %v3198_v18 }
 0x483   :  { %1496 = vmatprep.mubr.bf16.mxu0 %v3533_v6  ;;  %1539 = vmatprep.mubr.bf16.mxu1 %v3533_v6 }
 0x485   :  { %1467 = vmatpush1.bf16.msra.mxu0 %v3203_v19  ;;  %1510 = vmatpush1.bf16.msra.mxu1 %v3206_v20 }
 0x486   :  { %1468 = vmatprep.subr.bf16.mxu0 %v3209_v21  ;;  %1511 = vmatprep.subr.bf16.mxu1 %v3212_v24 }
 0x489   :  { %1469 = vmatpush1.bf16.msra.mxu0 %v3215_v25  ;;  %1512 = vmatpush1.bf16.msra.mxu1 %v3218_v26 }
 0x48a   :  { %1470 = vmatprep.subr.bf16.mxu0 %v3221_v27  ;;  %1513 = vmatprep.subr.bf16.mxu1 %v3224_v29 }
 0x48d   :  { %1471 = vmatpush1.bf16.msra.mxu0 %v3227_v30  ;;  %1514 = vmatpush1.bf16.msra.mxu1 %v3230_v31 }
 0x48e   :  { %1472 = vmatprep.subr.bf16.mxu0 %v3233_v32  ;;  %1515 = vmatprep.subr.bf16.mxu1 %v3236_v33 }
 0x491   :  { %1473 = vmatpush1.bf16.msra.mxu0 %v3239_v36  ;;  %1516 = vmatpush1.bf16.msra.mxu1 %v3242_v37 }
 0x492   :  { %1474 = vmatprep.subr.bf16.mxu0 %v3245_v38  ;;  %1517 = vmatprep.subr.bf16.mxu1 %v3248_v39 }
 0x495   :  { %1475 = vmatpush1.bf16.msra.mxu0 %v3251_v41  ;;  %1518 = vmatpush1.bf16.msra.mxu1 %v3254_v42 }
 0x496   :  { %1476 = vmatprep.subr.bf16.mxu0 %v3257_v43  ;;  %1519 = vmatprep.subr.bf16.mxu1 %v3260_v44 }
 0x499   :  { %1477 = vmatpush1.bf16.msra.mxu0 %v3263_v47  ;;  %1520 = vmatpush1.bf16.msra.mxu1 %v3266_v48 }
 0x49a   :  { %1478 = vmatprep.subr.bf16.mxu0 %v3269_v49  ;;  %1521 = vmatprep.subr.bf16.mxu1 %v3272_v51 }
 0x49d   :  { %1479 = vmatpush1.bf16.msra.mxu0 %v3275_v50  ;;  %1522 = vmatpush1.bf16.msra.mxu1 %v3278_v59 }
 0x49e   :  { %1619 = vmatprep.subr.bf16.mxu0 %v3167_v9  ;;  %1662 = vmatprep.subr.bf16.mxu1 %v3170_v11 }
 0x540   :  { %v1343_v0 = vpop.f32.mrf.mxu0  ;;  %v1386_v2 = vpop.f32.mrf.mxu1 }
 0x541   :  { %v1404_v22 = vadd.f32 %v1343_v0, %v3553_v28  ;;  %v1406_v54 = vadd.f32 %v1386_v2, %v3557_v15 }
 0x542   :  { %v1345_v45 = vpop.f32.mrf.mxu0  ;;  %v1388_v8 = vpop.f32.mrf.mxu1 }
 0x543   :  { %v2065_v55 = vmul.f32 -1.442695, %v1404_v22  ;;  %v1405_v3 = vadd.f32 %v1345_v45, %v3554_v57  ;;  %v2067_v10 = vmul.f32 -1.442695, %v1406_v54  ;;  %v1407_v13 = vadd.f32 %v1388_v8, %v3559_v62 }
 0x544   :  { %v1347_v61 = vpop.f32.mrf.mxu0  ;;  %v1390_v52 = vpop.f32.mrf.mxu1 }
 0x545   :  { %2284 = vpow2.f32 %v2065_v55  ;;  %v2066_v5 = vmul.f32 -1.442695, %v1405_v3  ;;  %v1408_v53 = vadd.f32 %v1347_v61, %v3555_v35  ;;  %v1410_v60 = vadd.f32 %v1390_v52, %v3558_v58  ;;  %v3560_v55 = vld [vmem:[#allocation49_spill] sm:$0xff] }
 0x546   :  { %v1349_v1 = vpop.f32.mrf.mxu0  ;;  %v1392_v7 = vpop.f32.mrf.mxu1 }
 0x547   :  { %2286 = vpow2.f32 %v2066_v5  ;;  %v2068_v17 = vmul.f32 -1.442695, %v1408_v53  ;;  %v1409_v46 = vadd.f32 %v1349_v1, %v3556_v40  ;;  %v2070_v28 = vmul.f32 -1.442695, %v1410_v60 }
 0x548   :  { %v1411_v57 = vadd.f32 %v1392_v7, %v3560_v55 }
 0x549   :  { %2288 = vpow2.f32 %v2068_v17  ;;  %v2069_v34 = vmul.f32 -1.442695, %v1409_v46 }
 0x54b   :  { %2290 = vpow2.f32 %v2069_v34 }
 0x54c   :  { %2292 = vpow2.f32 %v2067_v10 }
 0x552   :  { %v2285_v56 = vpop.eup %2284 }
 0x553   :  { %v1430_v4 = vadd.f32 1.0, %v2285_v56 }
 0x554   :  { %v2287_v0 = vpop.eup %2286 }
 0x555   :  { %2294 = vrcp.f32 %v1430_v4  ;;  %v1431_v22 = vadd.f32 1.0, %v2287_v0 }
 0x556   :  { %v2289_v45 = vpop.eup %2288  ;;  %2296 = vtanh.f32 %v1407_v13 }
 0x557   :  { %2298 = vrcp.f32 %v1431_v22  ;;  %v1433_v3 = vadd.f32 1.0, %v2289_v45  ;;  %v3561_v22 = vld [vmem:[#allocation50_spill] sm:$0xff] }
 0x558   :  { %v2291_v61 = vpop.eup %2290  ;;  %2300 = vpow2.f32 %v2070_v28 }
 0x559   :  { %2302 = vrcp.f32 %v1433_v3  ;;  %v1434_v2 = vadd.f32 1.0, %v2291_v61  ;;  %v2293_v5 = vpop.eup %2292  ;;  %v3562_v3 = vld [vmem:[#allocation52_spill] sm:$0xff] }
 0x55a   :  { %2304 = vtanh.f32 %v1411_v57  ;;  %v1432_v17 = vadd.f32 1.0, %v2293_v5 }
 0x55b   :  { %2306 = vrcp.f32 %v1434_v2 }
 0x55c   :  { %2308 = vrcp.f32 %v1432_v17 }
 0x562   :  { %v2295_v35 = vpop.eup %2294 }
 0x563   :  { %v2297_v53 = vpop.eup %2296  ;;  %v1452_v8 = vmul.f32 %v2295_v35, %v3293_v12 }
 0x564   :  { %v2299_v1 = vpop.eup %2298 }
 0x565   :  { %v2301_v40 = vpop.eup %2300  ;;  %v1450_v46 = vmul.f32 %v2299_v1, %v2297_v53  ;;  %v3563_v53 = vld [vmem:[#allocation54_spill] sm:$0xff] }
 0x566   :  { %v2303_v34 = vpop.eup %2302  ;;  %v1435_v10 = vadd.f32 1.0, %v2301_v40 }
 0x567   :  { %v2305_v15 = vpop.eup %2304  ;;  %v1454_v54 = vadd.f32 %v1452_v8, %v1450_v46  ;;  %v1453_v60 = vmul.f32 %v2303_v34, %v3296_v23  ;;  %v3564_v46 = vld [vmem:[#allocation56_spill] sm:$0xff]  ;;  %v3565_v34 = vld [vmem:[#allocation51_spill] sm:$0xff] }
 0x568   :  { %v2307_v52 = vpop.eup %2306 }
 0x569   :  { %2310 = vtanh.f32 %v1454_v54  ;;  %v1451_v58 = vmul.f32 %v2307_v52, %v2305_v15  ;;  %v2309_v62 = vpop.eup %2308 }
 0x56a   :  { %2312 = vrcp.f32 %v1435_v10  ;;  %v3566_v10 = vld [vmem:[#allocation55_spill] sm:$0xff] }
 0x56b   :  { %v1455_v56 = vadd.f32 %v1453_v60, %v1451_v58 }
 0x56d   :  { %2314 = vtanh.f32 %v1455_v56  ;;  %v3567_v56 = vld [vmem:[#allocation53_spill] sm:$0xff] }
 0x576   :  { %v3343_v13 = vpop.eup %2310 }
 0x577   :  { %v1458_v4 = vmul.f32 %v3343_v13, %v2309_v62  ;;  %v2313_v7 = vpop.eup %2312 }
 0x579   :  { %1461 = vst [vmem:[#allocation14 + $0x40] sm:$0xff] %v1458_v4 }
 0x57a   :  { %v3346_v12 = vpop.eup %2314 }
 0x57b   :  { %v1459_v0 = vmul.f32 %v3346_v12, %v2313_v7 }
 0x57d   :  { %1462 = vst [vmem:[#allocation14 + $0x48] sm:$0xff] %v1459_v0  ;;  %v1463_v28 = vpack.c.bf16 %v1459_v0, %v1458_v4 }
 0x57f   :  { %1497 = vmatmul.mubr.bf16.vlgmr.msra.gmra.mxu0 %v1463_v28  ;;  %1540 = vmatmul.mubr.bf16.vlgmr.msra.gmra.mxu1 %v1463_v28 }
 0x580   :  { %1620 = vmatpush1.bf16.msra.mxu0 %v3189_v14  ;;  %1663 = vmatpush1.bf16.msra.mxu1 %v3192_v63 }
 0x581   :  { %1621 = vmatprep.subr.bf16.mxu0 %v3195_v16  ;;  %1664 = vmatprep.subr.bf16.mxu1 %v3198_v18 }
 0x582   :  { %1651 = vmatprep.mubr.bf16.mxu0 %v3533_v6  ;;  %1694 = vmatprep.mubr.bf16.mxu1 %v3533_v6 }
 0x584   :  { %1622 = vmatpush1.bf16.msra.mxu0 %v3203_v19  ;;  %1665 = vmatpush1.bf16.msra.mxu1 %v3206_v20 }
 0x585   :  { %1623 = vmatprep.subr.bf16.mxu0 %v3209_v21  ;;  %1666 = vmatprep.subr.bf16.mxu1 %v3212_v24 }
 0x588   :  { %1624 = vmatpush1.bf16.msra.mxu0 %v3215_v25  ;;  %1667 = vmatpush1.bf16.msra.mxu1 %v3218_v26 }
 0x589   :  { %1625 = vmatprep.subr.bf16.mxu0 %v3221_v27  ;;  %1668 = vmatprep.subr.bf16.mxu1 %v3224_v29 }
 0x58c   :  { %1626 = vmatpush1.bf16.msra.mxu0 %v3227_v30  ;;  %1669 = vmatpush1.bf16.msra.mxu1 %v3230_v31 }
 0x58d   :  { %1627 = vmatprep.subr.bf16.mxu0 %v3233_v32  ;;  %1670 = vmatprep.subr.bf16.mxu1 %v3236_v33 }
 0x590   :  { %1628 = vmatpush1.bf16.msra.mxu0 %v3239_v36  ;;  %1671 = vmatpush1.bf16.msra.mxu1 %v3242_v37 }
 0x591   :  { %1629 = vmatprep.subr.bf16.mxu0 %v3245_v38  ;;  %1672 = vmatprep.subr.bf16.mxu1 %v3248_v39 }
 0x594   :  { %1630 = vmatpush1.bf16.msra.mxu0 %v3251_v41  ;;  %1673 = vmatpush1.bf16.msra.mxu1 %v3254_v42 }
 0x595   :  { %1631 = vmatprep.subr.bf16.mxu0 %v3257_v43  ;;  %1674 = vmatprep.subr.bf16.mxu1 %v3260_v44 }
 0x598   :  { %1632 = vmatpush1.bf16.msra.mxu0 %v3263_v47  ;;  %1675 = vmatpush1.bf16.msra.mxu1 %v3266_v48 }
 0x599   :  { %1633 = vmatprep.subr.bf16.mxu0 %v3269_v49  ;;  %1676 = vmatprep.subr.bf16.mxu1 %v3272_v51 }
 0x59c   :  { %1634 = vmatpush1.bf16.msra.mxu0 %v3275_v50  ;;  %1677 = vmatpush1.bf16.msra.mxu1 %v3278_v59 }
 0x59d   :  { %1774 = vmatprep.subr.bf16.mxu0 %v3167_v9  ;;  %1817 = vmatprep.subr.bf16.mxu1 %v3170_v11 }
 0x63f   :  { %v1498_v23 = vpop.f32.mrf.mxu0  ;;  %v1541_v5 = vpop.f32.mrf.mxu1 }
 0x640   :  { %v1559_v45 = vadd.f32 %v1498_v23, %v3561_v22  ;;  %v1561_v15 = vadd.f32 %v1541_v5, %v3565_v34 }
 0x641   :  { %v1500_v55 = vpop.f32.mrf.mxu0  ;;  %v1543_v8 = vpop.f32.mrf.mxu1 }
 0x642   :  { %v2071_v57 = vmul.f32 -1.442695, %v1559_v45  ;;  %v1560_v61 = vadd.f32 %v1500_v55, %v3562_v3  ;;  %v2073_v52 = vmul.f32 -1.442695, %v1561_v15  ;;  %v1562_v62 = vadd.f32 %v1543_v8, %v3567_v56  ;;  %v3568_v45 = vld [vmem:[#allocation57_spill] sm:$0xff] }
 0x643   :  { %v1502_v2 = vpop.f32.mrf.mxu0  ;;  %v1545_v54 = vpop.f32.mrf.mxu1 }
 0x644   :  { %2316 = vpow2.f32 %v2071_v57  ;;  %v2072_v35 = vmul.f32 -1.442695, %v1560_v61  ;;  %v1563_v1 = vadd.f32 %v1502_v2, %v3563_v53  ;;  %v1565_v58 = vadd.f32 %v1545_v54, %v3566_v10 }
 0x645   :  { %v1504_v17 = vpop.f32.mrf.mxu0  ;;  %v1547_v7 = vpop.f32.mrf.mxu1 }
 0x646   :  { %2318 = vpow2.f32 %v2072_v35  ;;  %v2074_v40 = vmul.f32 -1.442695, %v1563_v1  ;;  %v1564_v9 = vadd.f32 %v1504_v17, %v3564_v46  ;;  %v2076_v28 = vmul.f32 -1.442695, %v1565_v58 }
 0x647   :  { %v1566_v55 = vadd.f32 %v1547_v7, %v3568_v45 }
 0x648   :  { %2320 = vpow2.f32 %v2074_v40  ;;  %v2075_v11 = vmul.f32 -1.442695, %v1564_v9 }
 0x64a   :  { %2322 = vpow2.f32 %v2075_v11 }
 0x64b   :  { %2324 = vpow2.f32 %v2073_v52 }
 0x651   :  { %v2317_v60 = vpop.eup %2316 }
 0x652   :  { %v1585_v4 = vadd.f32 1.0, %v2317_v60 }
 0x653   :  { %v2319_v0 = vpop.eup %2318 }
 0x654   :  { %2326 = vrcp.f32 %v1585_v4  ;;  %v1586_v23 = vadd.f32 1.0, %v2319_v0 }
 0x655   :  { %v2321_v22 = vpop.eup %2320  ;;  %2328 = vtanh.f32 %v1562_v62 }
 0x656   :  { %2330 = vrcp.f32 %v1586_v23  ;;  %v1588_v57 = vadd.f32 1.0, %v2321_v22 }
 0x657   :  { %v2323_v3 = vpop.eup %2322  ;;  %2332 = vpow2.f32 %v2076_v28  ;;  %v3576_v28 = vld [vmem:[#allocation65_spill] sm:$0xff] }
 0x658   :  { %2334 = vrcp.f32 %v1588_v57  ;;  %v1589_v61 = vadd.f32 1.0, %v2323_v3  ;;  %v2325_v2 = vpop.eup %2324 }
 0x659   :  { %2336 = vtanh.f32 %v1566_v55  ;;  %v1587_v1 = vadd.f32 1.0, %v2325_v2 }
 0x65a   :  { %2338 = vrcp.f32 %v1589_v61 }
 0x65b   :  { %2340 = vrcp.f32 %v1587_v1 }
 0x661   :  { %v2327_v5 = vpop.eup %2326 }
 0x662   :  { %v2329_v35 = vpop.eup %2328  ;;  %v1607_v46 = vmul.f32 %v2327_v5, %v3343_v13 }
 0x663   :  { %v2331_v53 = vpop.eup %2330 }
 0x664   :  { %v2333_v17 = vpop.eup %2332  ;;  %v1605_v40 = vmul.f32 %v2331_v53, %v2329_v35 }
 0x665   :  { %v2335_v9 = vpop.eup %2334  ;;  %v1590_v15 = vadd.f32 1.0, %v2333_v17 }
 0x666   :  { %v2337_v8 = vpop.eup %2336  ;;  %v1609_v11 = vadd.f32 %v1607_v46, %v1605_v40  ;;  %v1608_v52 = vmul.f32 %v2335_v9, %v3346_v12 }
 0x667   :  { %v2339_v34 = vpop.eup %2338 }
 0x668   :  { %2342 = vtanh.f32 %v1609_v11  ;;  %v1606_v54 = vmul.f32 %v2339_v34, %v2337_v8  ;;  %v2341_v58 = vpop.eup %2340 }
 0x669   :  { %2344 = vrcp.f32 %v1590_v15 }
 0x66a   :  { %v1610_v10 = vadd.f32 %v1608_v52, %v1606_v54 }
 0x66c   :  { %2346 = vtanh.f32 %v1610_v10 }
 0x675   :  { %v3393_v60 = vpop.eup %2342 }
 0x676   :  { %v1613_v56 = vmul.f32 %v3393_v60, %v2341_v58  ;;  %v2345_v62 = vpop.eup %2344 }
 0x678   :  { %1616 = vst [vmem:[#allocation14 + $0x50] sm:$0xff] %v1613_v56 }
 0x679   :  { %v3396_v13 = vpop.eup %2346 }
 0x67a   :  { %v1614_v4 = vmul.f32 %v3396_v13, %v2345_v62 }
 0x67c   :  { %1617 = vst [vmem:[#allocation14 + $0x58] sm:$0xff] %v1614_v4  ;;  %v1618_v7 = vpack.c.bf16 %v1614_v4, %v1613_v56 }
 0x67e   :  { %1652 = vmatmul.mubr.bf16.vlgmr.msra.gmra.mxu0 %v1618_v7  ;;  %1695 = vmatmul.mubr.bf16.vlgmr.msra.gmra.mxu1 %v1618_v7  ;;  %v3577_v7 = vld [vmem:[#allocation66_spill] sm:$0xff] }
 0x67f   :  { %1775 = vmatpush1.bf16.msra.mxu0 %v3189_v14  ;;  %1818 = vmatpush1.bf16.msra.mxu1 %v3192_v63  ;;  %v3569_v14 = vld [vmem:[#allocation58_spill] sm:$0xff] }
 0x680   :  { %1776 = vmatprep.subr.bf16.mxu0 %v3195_v16  ;;  %1819 = vmatprep.subr.bf16.mxu1 %v3198_v18 }
 0x681   :  { %1806 = vmatprep.mubr.bf16.mxu0 %v3533_v6  ;;  %1849 = vmatprep.mubr.bf16.mxu1 %v3533_v6 }
 0x683   :  { %1777 = vmatpush1.bf16.msra.mxu0 %v3203_v19  ;;  %1820 = vmatpush1.bf16.msra.mxu1 %v3206_v20  ;;  %v3570_v19 = vld [vmem:[#allocation60_spill] sm:$0xff] }
 0x684   :  { %1778 = vmatprep.subr.bf16.mxu0 %v3209_v21  ;;  %1821 = vmatprep.subr.bf16.mxu1 %v3212_v24 }
 0x687   :  { %1779 = vmatpush1.bf16.msra.mxu0 %v3215_v25  ;;  %1822 = vmatpush1.bf16.msra.mxu1 %v3218_v26  ;;  %v3571_v26 = vld [vmem:[#allocation62_spill] sm:$0xff] }
 0x688   :  { %1780 = vmatprep.subr.bf16.mxu0 %v3221_v27  ;;  %1823 = vmatprep.subr.bf16.mxu1 %v3224_v29 }
 0x68b   :  { %1781 = vmatpush1.bf16.msra.mxu0 %v3227_v30  ;;  %1824 = vmatpush1.bf16.msra.mxu1 %v3230_v31  ;;  %v3572_v31 = vld [vmem:[#allocation64_spill] sm:$0xff] }
 0x68c   :  { %1782 = vmatprep.subr.bf16.mxu0 %v3233_v32  ;;  %1825 = vmatprep.subr.bf16.mxu1 %v3236_v33 }
 0x68f   :  { %1783 = vmatpush1.bf16.msra.mxu0 %v3239_v36  ;;  %1826 = vmatpush1.bf16.msra.mxu1 %v3242_v37  ;;  %v3573_v37 = vld [vmem:[#allocation59_spill] sm:$0xff] }
 0x690   :  { %1784 = vmatprep.subr.bf16.mxu0 %v3245_v38  ;;  %1827 = vmatprep.subr.bf16.mxu1 %v3248_v39 }
 0x693   :  { %1785 = vmatpush1.bf16.msra.mxu0 %v3251_v41  ;;  %1828 = vmatpush1.bf16.msra.mxu1 %v3254_v42  ;;  %v3574_v42 = vld [vmem:[#allocation63_spill] sm:$0xff] }
 0x694   :  { %1786 = vmatprep.subr.bf16.mxu0 %v3257_v43  ;;  %1829 = vmatprep.subr.bf16.mxu1 %v3260_v44 }
 0x697   :  { %1787 = vmatpush1.bf16.msra.mxu0 %v3263_v47  ;;  %1830 = vmatpush1.bf16.msra.mxu1 %v3266_v48  ;;  %v3575_v47 = vld [vmem:[#allocation61_spill] sm:$0xff] }
 0x698   :  { %1788 = vmatprep.subr.bf16.mxu0 %v3269_v49  ;;  %1831 = vmatprep.subr.bf16.mxu1 %v3272_v51 }
 0x69b   :  { %1789 = vmatpush1.bf16.msra.mxu0 %v3275_v50  ;;  %1832 = vmatpush1.bf16.msra.mxu1 %v3278_v59 }
 0x73e   :  { %v1653_v6 = vpop.f32.mrf.mxu0  ;;  %v1696_v24 = vpop.f32.mrf.mxu1 }
 0x73f   :  { %v1714_v63 = vadd.f32 %v1653_v6, %v3569_v14  ;;  %v1716_v38 = vadd.f32 %v1696_v24, %v3573_v37 }
 0x740   :  { %v1655_v16 = vpop.f32.mrf.mxu0  ;;  %v1698_v33 = vpop.f32.mrf.mxu1 }
 0x741   :  { %v2077_v18 = vmul.f32 -1.442695, %v1714_v63  ;;  %v1715_v20 = vadd.f32 %v1655_v16, %v3570_v19  ;;  %v2079_v41 = vmul.f32 -1.442695, %v1716_v38  ;;  %v1717_v48 = vadd.f32 %v1698_v33, %v3575_v47  ;;  %v3578_v63 = vld [vmem:[#allocation68_spill] sm:$0xff]  ;;  %v3582_v38 = vld [vmem:[#allocation71_spill] sm:$0xff] }
 0x742   :  { %v1657_v21 = vpop.f32.mrf.mxu0  ;;  %v1700_v39 = vpop.f32.mrf.mxu1 }
 0x743   :  { %2348 = vpow2.f32 %v2077_v18  ;;  %v2078_v25 = vmul.f32 -1.442695, %v1715_v20  ;;  %v1718_v27 = vadd.f32 %v1657_v21, %v3571_v26  ;;  %v1720_v43 = vadd.f32 %v1700_v39, %v3574_v42  ;;  %v3579_v21 = vld [vmem:[#allocation70_spill] sm:$0xff]  ;;  %v3583_v42 = vld [vmem:[#allocation69_spill] sm:$0xff] }
 0x744   :  { %v1659_v29 = vpop.f32.mrf.mxu0  ;;  %v1702_v51 = vpop.f32.mrf.mxu1 }
 0x745   :  { %2350 = vpow2.f32 %v2078_v25  ;;  %v2080_v30 = vmul.f32 -1.442695, %v1718_v27  ;;  %v1719_v32 = vadd.f32 %v1659_v29, %v3572_v31  ;;  %v2082_v59 = vmul.f32 -1.442695, %v1720_v43  ;;  %v3580_v27 = vld [vmem:[#allocation72_spill] sm:$0xff] }
 0x746   :  { %v1721_v23 = vadd.f32 %v1702_v51, %v3576_v28 }
 0x747   :  { %2352 = vpow2.f32 %v2080_v30  ;;  %v2081_v36 = vmul.f32 -1.442695, %v1719_v32  ;;  %v3581_v32 = vld [vmem:[#allocation67_spill] sm:$0xff] }
 0x749   :  { %2354 = vpow2.f32 %v2081_v36 }
 0x74a   :  { %2356 = vpow2.f32 %v2079_v41 }
 0x750   :  { %v2349_v44 = vpop.eup %2348 }
 0x751   :  { %v1740_v49 = vadd.f32 1.0, %v2349_v44 }
 0x752   :  { %v2351_v50 = vpop.eup %2350 }
 0x753   :  { %2358 = vrcp.f32 %v1740_v49  ;;  %v1741_v12 = vadd.f32 1.0, %v2351_v50 }
 0x754   :  { %v2353_v0 = vpop.eup %2352  ;;  %2360 = vtanh.f32 %v1717_v48 }
 0x755   :  { %2362 = vrcp.f32 %v1741_v12  ;;  %v1743_v22 = vadd.f32 1.0, %v2353_v0 }
 0x756   :  { %v2355_v45 = vpop.eup %2354  ;;  %2364 = vpow2.f32 %v2082_v59  ;;  %v3584_v59 = vld [vmem:[#allocation73_spill] sm:$0xff] }
 0x757   :  { %2366 = vrcp.f32 %v1743_v22  ;;  %v1744_v55 = vadd.f32 1.0, %v2355_v45  ;;  %v2357_v57 = vpop.eup %2356 }
 0x758   :  { %2368 = vtanh.f32 %v1721_v23  ;;  %v1742_v5 = vadd.f32 1.0, %v2357_v57 }
 0x759   :  { %2370 = vrcp.f32 %v1744_v55 }
 0x75a   :  { %2372 = vrcp.f32 %v1742_v5 }
 0x760   :  { %v2359_v3 = vpop.eup %2358 }
 0x761   :  { %v2361_v61 = vpop.eup %2360  ;;  %v1762_v1 = vmul.f32 %v2359_v3, %v3393_v60 }
 0x762   :  { %v2363_v2 = vpop.eup %2362 }
 0x763   :  { %v2365_v35 = vpop.eup %2364  ;;  %v1760_v53 = vmul.f32 %v2363_v2, %v2361_v61 }
 0x764   :  { %v2367_v17 = vpop.eup %2366  ;;  %v1745_v8 = vadd.f32 1.0, %v2365_v35 }
 0x765   :  { %v2369_v40 = vpop.eup %2368  ;;  %v1764_v46 = vadd.f32 %v1762_v1, %v1760_v53  ;;  %v1763_v34 = vmul.f32 %v2367_v17, %v3396_v13 }
 0x766   :  { %v2371_v9 = vpop.eup %2370 }
 0x767   :  { %2374 = vtanh.f32 %v1764_v46  ;;  %v1761_v11 = vmul.f32 %v2371_v9, %v2369_v40  ;;  %v2373_v54 = vpop.eup %2372 }
 0x768   :  { %2376 = vrcp.f32 %v1745_v8 }
 0x769   :  { %v1765_v15 = vadd.f32 %v1763_v34, %v1761_v11 }
 0x76b   :  { %2378 = vtanh.f32 %v1765_v15 }
 0x774   :  { %v2375_v52 = vpop.eup %2374 }
 0x775   :  { %v1768_v10 = vmul.f32 %v2375_v52, %v2373_v54  ;;  %v2377_v58 = vpop.eup %2376 }
 0x777   :  { %1771 = vst [vmem:[#allocation14 + $0x60] sm:$0xff] %v1768_v10 }
 0x778   :  { %v3441_v56 = vpop.eup %2378 }
 0x779   :  { %v1769_v60 = vmul.f32 %v3441_v56, %v2377_v58 }
 0x77b   :  { %1772 = vst [vmem:[#allocation14 + $0x68] sm:$0xff] %v1769_v60  ;;  %v1773_v62 = vpack.c.bf16 %v1769_v60, %v1768_v10 }
 0x77d   :  { %1807 = vmatmul.mubr.bf16.vlgmr.msra.gmra.mxu0 %v1773_v62  ;;  %1850 = vmatmul.mubr.bf16.vlgmr.msra.gmra.mxu1 %v1773_v62 }
 0x83d   :  { %v1808_v4 = vpop.f32.mrf.mxu0  ;;  %v1851_v19 = vpop.f32.mrf.mxu1 }
 0x83e   :  { %v1869_v6 = vadd.f32 %v1808_v4, %v3577_v7  ;;  %v1871_v33 = vadd.f32 %v1851_v19, %v3581_v32 }
 0x83f   :  { %v1810_v13 = vpop.f32.mrf.mxu0  ;;  %v1853_v30 = vpop.f32.mrf.mxu1 }
 0x840   :  { %v2083_v14 = vmul.f32 -1.442695, %v1869_v6  ;;  %v1870_v16 = vadd.f32 %v1810_v13, %v3578_v63  ;;  %v2085_v37 = vmul.f32 -1.442695, %v1871_v33  ;;  %v1872_v43 = vadd.f32 %v1853_v30, %v3583_v42 }
 0x841   :  { %v1812_v18 = vpop.f32.mrf.mxu0  ;;  %v1855_v36 = vpop.f32.mrf.mxu1 }
 0x842   :  { %2380 = vpow2.f32 %v2083_v14  ;;  %v2084_v20 = vmul.f32 -1.442695, %v1870_v16  ;;  %v1873_v24 = vadd.f32 %v1812_v18, %v3579_v21  ;;  %v1875_v39 = vadd.f32 %v1855_v36, %v3582_v38 }
 0x843   :  { %v1814_v25 = vpop.f32.mrf.mxu0  ;;  %v1857_v47 = vpop.f32.mrf.mxu1 }
 0x844   :  { %2382 = vpow2.f32 %v2084_v20  ;;  %v2086_v26 = vmul.f32 -1.442695, %v1873_v24  ;;  %v1874_v29 = vadd.f32 %v1814_v25, %v3580_v27  ;;  %v2088_v49 = vmul.f32 -1.442695, %v1875_v39 }
 0x845   :  { %v1876_v12 = vadd.f32 %v1857_v47, %v3584_v59 }
 0x846   :  { %2384 = vpow2.f32 %v2086_v26  ;;  %v2087_v31 = vmul.f32 -1.442695, %v1874_v29 }
 0x848   :  { %2386 = vpow2.f32 %v2087_v31 }
 0x849   :  { %2388 = vpow2.f32 %v2085_v37 }
 0x84f   :  { %v2381_v41 = vpop.eup %2380 }
 0x850   :  { %v1895_v44 = vadd.f32 1.0, %v2381_v41 }
 0x851   :  { %v2383_v48 = vpop.eup %2382 }
 0x852   :  { %2390 = vrcp.f32 %v1895_v44  ;;  %v1896_v51 = vadd.f32 1.0, %v2383_v48 }
 0x853   :  { %v2385_v50 = vpop.eup %2384  ;;  %2392 = vtanh.f32 %v1872_v43 }
 0x854   :  { %2394 = vrcp.f32 %v1896_v51  ;;  %v1898_v0 = vadd.f32 1.0, %v2385_v50 }
 0x855   :  { %v2387_v28 = vpop.eup %2386  ;;  %2396 = vpow2.f32 %v2088_v49 }
 0x856   :  { %2398 = vrcp.f32 %v1898_v0  ;;  %v1899_v23 = vadd.f32 1.0, %v2387_v28  ;;  %v2389_v22 = vpop.eup %2388 }
 0x857   :  { %2400 = vtanh.f32 %v1876_v12  ;;  %v1897_v3 = vadd.f32 1.0, %v2389_v22 }
 0x858   :  { %2402 = vrcp.f32 %v1899_v23 }
 0x859   :  { %2404 = vrcp.f32 %v1897_v3 }
 0x85f   :  { %v2391_v45 = vpop.eup %2390 }
 0x860   :  { %v2393_v55 = vpop.eup %2392  ;;  %v1917_v5 = vmul.f32 %v2391_v45, %v2375_v52 }
 0x861   :  { %v2395_v57 = vpop.eup %2394 }
 0x862   :  { %v2397_v61 = vpop.eup %2396  ;;  %v1915_v2 = vmul.f32 %v2395_v57, %v2393_v55 }
 0x863   :  { %v2399_v35 = vpop.eup %2398  ;;  %v1900_v40 = vadd.f32 1.0, %v2397_v61 }
 0x864   :  { %v2401_v53 = vpop.eup %2400  ;;  %v1919_v1 = vadd.f32 %v1917_v5, %v1915_v2  ;;  %v1918_v9 = vmul.f32 %v2399_v35, %v3441_v56 }
 0x865   :  { %v2403_v17 = vpop.eup %2402 }
 0x866   :  { %2406 = vtanh.f32 %v1919_v1  ;;  %v1916_v46 = vmul.f32 %v2403_v17, %v2401_v53  ;;  %v2405_v11 = vpop.eup %2404 }
 0x867   :  { %2408 = vrcp.f32 %v1900_v40 }
 0x868   :  { %v1920_v8 = vadd.f32 %v1918_v9, %v1916_v46 }
 0x86a   :  { %2410 = vtanh.f32 %v1920_v8 }
 0x873   :  { %v2407_v34 = vpop.eup %2406 }
 0x874   :  { %1937 = vst [vmem:[#allocation17] sm:$0xff] %v2407_v34  ;;  %v1923_v15 = vmul.f32 %v2407_v34, %v2405_v11  ;;  %v2409_v54 = vpop.eup %2408 }
 0x876   :  { %1926 = vst [vmem:[#allocation14 + $0x70] sm:$0xff] %v1923_v15  ;;  %1935 = vst [vmem:[#allocation15] sm:$0xff] %v1923_v15 }
 0x877   :  { %v2411_v52 = vpop.eup %2410 }
 0x878   :  { %1938 = vst [vmem:[#allocation17 + $0x8] sm:$0xff] %v2411_v52  ;;  %v1924_v10 = vmul.f32 %v2411_v52, %v2409_v54 }
 0x87a   :  { %1927 = vst [vmem:[#allocation14 + $0x78] sm:$0xff] %v1924_v10  ;;  %1936 = vst [vmem:[#allocation15 + $0x8] sm:$0xff] %v1924_v10 }
 0x87b   :  { %2555 = shalt.err (!%p2552_p1)
}
 0x87c   :  { %1962 = dma.vmem_to_hbm [thread:$0]  %s1957_s30, 256, %s3478_s7, [#allocation16], %s2619_s17, %s2619_s17, %s2620_s18  }
 0x87d   :  { %s2564_s19 = scalar_lea.vmem %s1945_s11, 2048  ;;  %p2569_p3 = scmp.lt.s32.totalorder %s1945_s11, %s1945_s11 }
 0x87e   :  { %p2565_p2 = scmp.ne.s32.totalorder %s1945_s11, %s2564_s19  ;;  %p2570_p4 = scmp.lt.s32.totalorder %s2564_s19, %s2564_s19 }
 0x880   :  { %p2571_p5 = por %p2570_p4, %p2569_p3 }
 0x882   :  { %p2572_p6 = pnand %p2571_p5, %p2565_p2 }
 0x884   :  { %2575 = shalt.err (!%p2572_p6)
}
 0x885   :  { %1950 = dma.vmem_to_hbm [thread:$0]  %s1945_s11, 2048, %s3477_s6, [#allocation7], %s2619_s17, %s2619_s17, %s2620_s18  }
 0x886   :  { %s2584_s21 = scalar_lea.vmem %s1969_s13, 256  ;;  %p2589_p8 = scmp.lt.s32.totalorder %s1969_s13, %s1969_s13 }
 0x887   :  { %p2585_p7 = scmp.ne.s32.totalorder %s1969_s13, %s2584_s21  ;;  %p2590_p9 = scmp.lt.s32.totalorder %s2584_s21, %s2584_s21 }
 0x889   :  { %p2591_p10 = por %p2590_p9, %p2589_p8 }
 0x88b   :  { %p2592_p11 = pnand %p2591_p10, %p2585_p7 }
 0x88d   :  { %2595 = shalt.err (!%p2592_p11)
}
 0x88e   :  { %1974 = dma.vmem_to_hbm [thread:$0]  %s1969_s13, 256, %s3479_s8, [#allocation16], %s2619_s17, %s2619_s17, %s2620_s18  }
 0x88f   :  { %2610 = dma.done.wait [#allocation7], 2048  }
 0x890   :  { %2611 = vsyncadd [#allocation7], 4294965248 }
 0x891   :  { %2612 = dma.done.wait [#allocation16], 512  }
 0x892   :  { %2613 = vsyncadd [#allocation16], 4294966784 }
 0x893   :  { %1984 = vsyncpa [#allocation6], 1 }
 0x894   :  { %1985 = vsyncpa [#allocation9], 1 }
 0x895   :  { %1986 = vsyncpa [#allocation12], 1 }
 0x896   :  { %1987 = vsyncpa [#allocation7], 1 }
 0x897   :  { %1988 = vsyncpa [#allocation16], 1 }

</bundles_post_ra>
